<compile_context>
chip_gen: v5e
topology: v5e:2x2
jax: 0.10.0
libtpu: 0.0.40
codegen_flags: <defaults>
</compile_context>

<pallas_src>
import functools

import jax
import jax.numpy as jnp
from jax import lax
from jax.experimental import pallas as pl
from jax.experimental.pallas import tpu as pltpu


# Above the 16 MiB (v5e) / 32 MiB (v6e, v7x) scoped-VMEM defaults, still well
# below v7x's 64 MiB physical VMEM.  Actual working set here is << 1 MiB.
_VMEM_LIMIT = 48 * 1024 * 1024


# ----------------------------------------------------------------------------
# Fully fused EF.forward kernel, one grid step per batch element.
# ----------------------------------------------------------------------------
def _ef_kernel(x_ref, qp_ref,
               ew_ref, eb_ref,
               w11_ref, b11_ref, w12_ref, b12_ref,
               w21_ref, b21_ref, w22_ref, b22_ref,
               wq2_ref, wkv2_ref, wo2_ref,
               wq1_ref, wkv1_ref, wo1_ref,
               dw_ref, db_ref,
               o_ref):
    f32 = jnp.float32
    dt = x_ref.dtype                       # MXU input dtype (bf16 in the demo)
    c = ew_ref.shape[1]
    scale = 1.0 / (float(c) ** 0.5)

    x = x_ref[0]                            # (S, C_IN)
    qp = qp_ref[0]                          # (S, C)

    # ---------------- encoder (encoderFun -> encBlock1 -> encBlock2) --------
    x1 = jnp.dot(x, ew_ref[...], preferred_element_type=f32) \
        + eb_ref[...].astype(f32)                                    # (S, C)

    h1 = jnp.dot(x1.astype(dt), w11_ref[...], preferred_element_type=f32)
    h1 = jnp.maximum(h1 + b11_ref[...].astype(f32), 0.0)
    mem1 = x1 + jnp.dot(h1.astype(dt), w12_ref[...], preferred_element_type=f32) \
              + b12_ref[...].astype(f32)                             # (S, C)

    h2 = jnp.dot(mem1.astype(dt), w21_ref[...], preferred_element_type=f32)
    h2 = jnp.maximum(h2 + b21_ref[...].astype(f32), 0.0)
    mem2 = mem1 + jnp.dot(h2.astype(dt), w22_ref[...], preferred_element_type=f32) \
                + b22_ref[...].astype(f32)                           # (S, C)

    mem1_b = mem1.astype(dt)
    mem2_b = mem2.astype(dt)

    # ---------------- single-head cross-attention --------------------------
    def attn(q_in_b, mem_b, wq, wkv, wo):
        # scale folded into q (S,C) instead of the (S,S) score matrix
        q = (jnp.dot(q_in_b, wq, preferred_element_type=f32) * scale).astype(dt)
        # fused K/V projection: one (S,C) x (C,2C) matmul, computed ONCE per batch
        kv = jnp.dot(mem_b, wkv, preferred_element_type=f32)          # (S, 2C)
        k = kv[:, :c].astype(dt)
        v = kv[:, c:].astype(dt)
        # scores via dot_general contracting last axes (no explicit k.T)
        s = lax.dot_general(q, k, (((1,), (1,)), ((), ())),
                            preferred_element_type=f32)               # (S, S)
        s = s - jnp.max(s, axis=-1, keepdims=True)
        p = jnp.exp(s)
        p = p * pl.reciprocal(jnp.sum(p, axis=-1, keepdims=True), approx=True)
        a = jnp.dot(p.astype(dt), v, preferred_element_type=f32)      # (S, C)
        return jnp.dot(a.astype(dt), wo, preferred_element_type=f32)  # (S, C)

    # decBlock2: init_tgt == 0  =>  query = query_pos, residual term is zero.
    temp = attn(qp, mem2_b, wq2_ref[...], wkv2_ref[...], wo2_ref[...])

    # decBlock1: tgt = temp (stays in VMEM, never written to HBM).
    q1 = (temp + qp.astype(f32)).astype(dt)
    x2 = temp + attn(q1, mem1_b, wq1_ref[...], wkv1_ref[...], wo1_ref[...])

    # decoderFun, produced directly in transposed (C_OUT, S) form so the
    # output store is lane dense (S lanes) instead of C_OUT=4 masked lanes.
    out_t = lax.dot_general(dw_ref[...], x2.astype(dt), (((0,), (1,)), ((), ())),
                            preferred_element_type=f32)               # (C_OUT, S)
    out_t = out_t + db_ref[...].astype(f32)
    o_ref[0] = out_t.astype(o_ref.dtype)


def ef_pallas(x_bsc, query_pos, params):
    """x_bsc: (B, S, C_IN); query_pos: (B, S, C).  Returns (B, C_OUT, S)."""
    b, s, c_in = x_bsc.shape
    c = params["enc_w"].shape[1]
    c_ff = params["eb1_w1"].shape[1]
    c_out = params["dec_w"].shape[1]

    # Fuse Wk / Wv into one (C, 2C) matrix per decoder block.
    wkv2 = jnp.concatenate([params["db2_wk"], params["db2_wv"]], axis=1)
    wkv1 = jnp.concatenate([params["db1_wk"], params["db1_wv"]], axis=1)

    def const(shape):
        return pl.BlockSpec(shape, lambda bi, _s=shape: (0,) * len(_s))

    x_spec = pl.BlockSpec((1, s, c_in), lambda bi: (bi, 0, 0))
    qp_spec = pl.BlockSpec((1, s, c), lambda bi: (bi, 0, 0))
    out_spec = pl.BlockSpec((1, c_out, s), lambda bi: (bi, 0, 0))

    return pl.pallas_call(
        _ef_kernel,
        out_shape=jax.ShapeDtypeStruct((b, c_out, s), x_bsc.dtype),
        grid=(b,),
        in_specs=[
            x_spec, qp_spec,
            const((c_in, c)), const((1, c)),
            const((c, c_ff)), const((1, c_ff)), const((c_ff, c)), const((1, c)),
            const((c, c_ff)), const((1, c_ff)), const((c_ff, c)), const((1, c)),
            const((c, c)), const((c, 2 * c)), const((c, c)),
            const((c, c)), const((c, 2 * c)), const((c, c)),
            const((c, c_out)), const((c_out, 1)),
        ],
        out_specs=out_spec,
        compiler_params=pltpu.CompilerParams(
            # batch is the leading "parallel" axis -> v7x megacore shards
            # batches; mem1/mem2 are built once per batch and never re-fetched.
            dimension_semantics=("parallel",),
            vmem_limit_bytes=_VMEM_LIMIT),
    )(x_bsc, query_pos,
      params["enc_w"], params["enc_b"].reshape(1, c),
      params["eb1_w1"], params["eb1_b1"].reshape(1, c_ff),
      params["eb1_w2"], params["eb1_b2"].reshape(1, c),
      params["eb2_w1"], params["eb2_b1"].reshape(1, c_ff),
      params["eb2_w2"], params["eb2_b2"].reshape(1, c),
      params["db2_wq"], wkv2, params["db2_wo"],
      params["db1_wq"], wkv1, params["db1_wo"],
      params["dec_w"], params["dec_b"].reshape(c_out, 1))


# ----------------------------------------------------------------------------
# Parameter construction (deterministic, in-script)
# ----------------------------------------------------------------------------
def init_params(key, c_in, c, c_ff, c_out, dtype=jnp.bfloat16):
    ks = jax.random.split(key, 16)

    def w(k, shape):
        fan_in = shape[0]
        return (jax.random.normal(k, shape, jnp.float32)
                / jnp.sqrt(jnp.float32(fan_in))).astype(dtype)

    return {
        # encoderFun
        "enc_w": w(ks[0], (c_in, c)), "enc_b": jnp.zeros((c,), dtype),
        # encBlock1
        "eb1_w1": w(ks[1], (c, c_ff)), "eb1_b1": jnp.zeros((c_ff,), dtype),
        "eb1_w2": w(ks[2], (c_ff, c)), "eb1_b2": jnp.zeros((c,), dtype),
        # encBlock2
        "eb2_w1": w(ks[3], (c, c_ff)), "eb2_b1": jnp.zeros((c_ff,), dtype),
        "eb2_w2": w(ks[4], (c_ff, c)), "eb2_b2": jnp.zeros((c,), dtype),
        # decBlock2 (applied first, on mem2)
        "db2_wq": w(ks[5], (c, c)), "db2_wk": w(ks[6], (c, c)),
        "db2_wv": w(ks[7], (c, c)), "db2_wo": w(ks[8], (c, c)),
        # decBlock1 (applied second, on mem1)
        "db1_wq": w(ks[9], (c, c)), "db1_wk": w(ks[10], (c, c)),
        "db1_wv": w(ks[11], (c, c)), "db1_wo": w(ks[12], (c, c)),
        # decoderFun
        "dec_w": w(ks[13], (c, c_out)), "dec_b": jnp.zeros((c_out,), dtype),
    }


# ----------------------------------------------------------------------------
# EF.forward
# ----------------------------------------------------------------------------
@jax.jit
def ef_forward(x, params, qpos_key):
    b, t, h, w_, c_in = x.shape
    c = params["enc_w"].shape[1]
    c_out = params["dec_w"].shape[1]
    s = t * h * w_

    # query_pos = nn.Parameter(torch.randn(b,t,h,w,c)) — sampled fresh per
    # forward, matching the reference forward(); init_tgt = zeros is elided
    # (it only zeroes the first residual / query add).
    query_pos = jax.random.normal(qpos_key, (b, s, c),
                                  dtype=jnp.float32).astype(x.dtype)

    out_t = ef_pallas(x.reshape(b, s, c_in), query_pos, params)   # (B, C_OUT, S)
    # transpose back from the lane-dense kernel layout (layout plumbing only)
    return out_t.transpose(0, 2, 1).reshape(b, t, h, w_, c_out)


if __name__ == "__main__":
    B, T, H, W, C_IN = 2, 2, 8, 8, 4
    C, C_FF, C_OUT = 32, 64, 4
    DTYPE = jnp.bfloat16  # bf16 storage / MXU inputs; all accumulation in f32

    root = jax.random.PRNGKey(0)
    k_x, k_params, k_qpos = jax.random.split(root, 3)

    x = jax.random.normal(k_x, (B, T, H, W, C_IN), dtype=jnp.float32).astype(DTYPE)
    params = init_params(k_params, C_IN, C, C_FF, C_OUT, dtype=DTYPE)

    out = ef_forward(x, params, k_qpos)
    out = jax.block_until_ready(out)

    assert out.shape == (B, T, H, W, C_OUT), out.shape
    assert bool(jnp.all(jnp.isfinite(out.astype(jnp.float32))))
    print("KERNEL_OK")
</pallas_src>

<mosaic_0001>
module attributes {stable_mosaic.version = 11 : i64} {
  func.func @_ef_kernel(%arg0: i32, %arg1: memref<1x128x4xbf16, #tpu.memory_space<vmem>>, %arg2: memref<1x128x32xbf16, #tpu.memory_space<vmem>>, %arg3: memref<4x32xbf16, #tpu.memory_space<vmem>>, %arg4: memref<1x32xbf16, #tpu.memory_space<vmem>>, %arg5: memref<32x64xbf16, #tpu.memory_space<vmem>>, %arg6: memref<1x64xbf16, #tpu.memory_space<vmem>>, %arg7: memref<64x32xbf16, #tpu.memory_space<vmem>>, %arg8: memref<1x32xbf16, #tpu.memory_space<vmem>>, %arg9: memref<32x64xbf16, #tpu.memory_space<vmem>>, %arg10: memref<1x64xbf16, #tpu.memory_space<vmem>>, %arg11: memref<64x32xbf16, #tpu.memory_space<vmem>>, %arg12: memref<1x32xbf16, #tpu.memory_space<vmem>>, %arg13: memref<32x32xbf16, #tpu.memory_space<vmem>>, %arg14: memref<32x64xbf16, #tpu.memory_space<vmem>>, %arg15: memref<32x32xbf16, #tpu.memory_space<vmem>>, %arg16: memref<32x32xbf16, #tpu.memory_space<vmem>>, %arg17: memref<32x64xbf16, #tpu.memory_space<vmem>>, %arg18: memref<32x32xbf16, #tpu.memory_space<vmem>>, %arg19: memref<32x4xbf16, #tpu.memory_space<vmem>>, %arg20: memref<4x1xbf16, #tpu.memory_space<vmem>>, %arg21: memref<1x4x128xbf16, #tpu.memory_space<vmem>>) attributes {dimension_semantics = [#tpu.dimension_semantics<parallel>], iteration_bounds = array<i64: 2>, scalar_prefetch = 0 : i64, scratch_operands = 0 : i64, tpu.core_type = #tpu.core_type<tc>, window_params = [{transform_indices = @transform_0, window_bounds = array<i64: 1, 128, 4>}, {transform_indices = @transform_1, window_bounds = array<i64: 1, 128, 32>}, {pipeline_mode = #tpu.pipeline_mode<synchronous>, transform_indices = @transform_2, window_bounds = array<i64: 4, 32>}, {pipeline_mode = #tpu.pipeline_mode<synchronous>, transform_indices = @transform_3, window_bounds = array<i64: 1, 32>}, {pipeline_mode = #tpu.pipeline_mode<synchronous>, transform_indices = @transform_4, window_bounds = array<i64: 32, 64>}, {pipeline_mode = #tpu.pipeline_mode<synchronous>, transform_indices = @transform_5, window_bounds = array<i64: 1, 64>}, {pipeline_mode = #tpu.pipeline_mode<synchronous>, transform_indices = @transform_6, window_bounds = array<i64: 64, 32>}, {pipeline_mode = #tpu.pipeline_mode<synchronous>, transform_indices = @transform_7, window_bounds = array<i64: 1, 32>}, {pipeline_mode = #tpu.pipeline_mode<synchronous>, transform_indices = @transform_8, window_bounds = array<i64: 32, 64>}, {pipeline_mode = #tpu.pipeline_mode<synchronous>, transform_indices = @transform_9, window_bounds = array<i64: 1, 64>}, {pipeline_mode = #tpu.pipeline_mode<synchronous>, transform_indices = @transform_10, window_bounds = array<i64: 64, 32>}, {pipeline_mode = #tpu.pipeline_mode<synchronous>, transform_indices = @transform_11, window_bounds = array<i64: 1, 32>}, {pipeline_mode = #tpu.pipeline_mode<synchronous>, transform_indices = @transform_12, window_bounds = array<i64: 32, 32>}, {pipeline_mode = #tpu.pipeline_mode<synchronous>, transform_indices = @transform_13, window_bounds = array<i64: 32, 64>}, {pipeline_mode = #tpu.pipeline_mode<synchronous>, transform_indices = @transform_14, window_bounds = array<i64: 32, 32>}, {pipeline_mode = #tpu.pipeline_mode<synchronous>, transform_indices = @transform_15, window_bounds = array<i64: 32, 32>}, {pipeline_mode = #tpu.pipeline_mode<synchronous>, transform_indices = @transform_16, window_bounds = array<i64: 32, 64>}, {pipeline_mode = #tpu.pipeline_mode<synchronous>, transform_indices = @transform_17, window_bounds = array<i64: 32, 32>}, {pipeline_mode = #tpu.pipeline_mode<synchronous>, transform_indices = @transform_18, window_bounds = array<i64: 32, 4>}, {pipeline_mode = #tpu.pipeline_mode<synchronous>, transform_indices = @transform_19, window_bounds = array<i64: 4, 1>}, {transform_indices = @transform_20, window_bounds = array<i64: 1, 4, 128>}]} {
    %c0 = arith.constant 0 : index
    %c0_0 = arith.constant 0 : index
    %c0_1 = arith.constant 0 : index
    %0 = vector.load %arg1[%c0, %c0_0, %c0_1] : memref<1x128x4xbf16, #tpu.memory_space<vmem>>, vector<1x128x4xbf16>
    %1 = vector.shape_cast %0 : vector<1x128x4xbf16> to vector<128x4xbf16>
    %c0_2 = arith.constant 0 : index
    %c0_3 = arith.constant 0 : index
    %c0_4 = arith.constant 0 : index
    %2 = vector.load %arg2[%c0_2, %c0_3, %c0_4] : memref<1x128x32xbf16, #tpu.memory_space<vmem>>, vector<1x128x32xbf16>
    %3 = vector.shape_cast %2 : vector<1x128x32xbf16> to vector<128x32xbf16>
    %c0_5 = arith.constant 0 : index
    %c0_6 = arith.constant 0 : index
    %4 = vector.load %arg3[%c0_5, %c0_6] : memref<4x32xbf16, #tpu.memory_space<vmem>>, vector<4x32xbf16>
    %cst = arith.constant dense<0.000000e+00> : vector<128x32xf32>
    %5 = tpu.matmul %1, %4, %cst {dimension_numbers = #tpu.dot_dimension_numbers<[1], [0], [0], [1], [0, 0, 1, 1], [], []>} : vector<128x4xbf16>, vector<4x32xbf16>, vector<128x32xf32> -> vector<128x32xf32>
    %c0_7 = arith.constant 0 : index
    %c0_8 = arith.constant 0 : index
    %6 = vector.load %arg4[%c0_7, %c0_8] : memref<1x32xbf16, #tpu.memory_space<vmem>>, vector<1x32xbf16>
    %7 = arith.extf %6 : vector<1x32xbf16> to vector<1x32xf32>
    %8 = vector.broadcast %7 : vector<1x32xf32> to vector<128x32xf32>
    %9 = arith.addf %5, %8 : vector<128x32xf32>
    %10 = arith.truncf %9 : vector<128x32xf32> to vector<128x32xbf16>
    %c0_9 = arith.constant 0 : index
    %c0_10 = arith.constant 0 : index
    %11 = vector.load %arg5[%c0_9, %c0_10] : memref<32x64xbf16, #tpu.memory_space<vmem>>, vector<32x64xbf16>
    %cst_11 = arith.constant dense<0.000000e+00> : vector<128x64xf32>
    %12 = tpu.matmul %10, %11, %cst_11 {dimension_numbers = #tpu.dot_dimension_numbers<[1], [0], [0], [1], [0, 0, 1, 1], [], []>} : vector<128x32xbf16>, vector<32x64xbf16>, vector<128x64xf32> -> vector<128x64xf32>
    %c0_12 = arith.constant 0 : index
    %c0_13 = arith.constant 0 : index
    %13 = vector.load %arg6[%c0_12, %c0_13] : memref<1x64xbf16, #tpu.memory_space<vmem>>, vector<1x64xbf16>
    %14 = arith.extf %13 : vector<1x64xbf16> to vector<1x64xf32>
    %15 = vector.broadcast %14 : vector<1x64xf32> to vector<128x64xf32>
    %16 = arith.addf %12, %15 : vector<128x64xf32>
    %cst_14 = arith.constant 0.000000e+00 : f32
    %17 = vector.broadcast %cst_14 : f32 to vector<128x64xf32>
    %18 = arith.maximumf %16, %17 : vector<128x64xf32>
    %19 = arith.truncf %18 : vector<128x64xf32> to vector<128x64xbf16>
    %c0_15 = arith.constant 0 : index
    %c0_16 = arith.constant 0 : index
    %20 = vector.load %arg7[%c0_15, %c0_16] : memref<64x32xbf16, #tpu.memory_space<vmem>>, vector<64x32xbf16>
    %cst_17 = arith.constant dense<0.000000e+00> : vector<128x32xf32>
    %21 = tpu.matmul %19, %20, %cst_17 {dimension_numbers = #tpu.dot_dimension_numbers<[1], [0], [0], [1], [0, 0, 1, 1], [], []>} : vector<128x64xbf16>, vector<64x32xbf16>, vector<128x32xf32> -> vector<128x32xf32>
    %22 = arith.addf %9, %21 : vector<128x32xf32>
    %c0_18 = arith.constant 0 : index
    %c0_19 = arith.constant 0 : index
    %23 = vector.load %arg8[%c0_18, %c0_19] : memref<1x32xbf16, #tpu.memory_space<vmem>>, vector<1x32xbf16>
    %24 = arith.extf %23 : vector<1x32xbf16> to vector<1x32xf32>
    %25 = vector.broadcast %24 : vector<1x32xf32> to vector<128x32xf32>
    %26 = arith.addf %22, %25 : vector<128x32xf32>
    %27 = arith.truncf %26 : vector<128x32xf32> to vector<128x32xbf16>
    %c0_20 = arith.constant 0 : index
    %c0_21 = arith.constant 0 : index
    %28 = vector.load %arg9[%c0_20, %c0_21] : memref<32x64xbf16, #tpu.memory_space<vmem>>, vector<32x64xbf16>
    %cst_22 = arith.constant dense<0.000000e+00> : vector<128x64xf32>
    %29 = tpu.matmul %27, %28, %cst_22 {dimension_numbers = #tpu.dot_dimension_numbers<[1], [0], [0], [1], [0, 0, 1, 1], [], []>} : vector<128x32xbf16>, vector<32x64xbf16>, vector<128x64xf32> -> vector<128x64xf32>
    %c0_23 = arith.constant 0 : index
    %c0_24 = arith.constant 0 : index
    %30 = vector.load %arg10[%c0_23, %c0_24] : memref<1x64xbf16, #tpu.memory_space<vmem>>, vector<1x64xbf16>
    %31 = arith.extf %30 : vector<1x64xbf16> to vector<1x64xf32>
    %32 = vector.broadcast %31 : vector<1x64xf32> to vector<128x64xf32>
    %33 = arith.addf %29, %32 : vector<128x64xf32>
    %cst_25 = arith.constant 0.000000e+00 : f32
    %34 = vector.broadcast %cst_25 : f32 to vector<128x64xf32>
    %35 = arith.maximumf %33, %34 : vector<128x64xf32>
    %36 = arith.truncf %35 : vector<128x64xf32> to vector<128x64xbf16>
    %c0_26 = arith.constant 0 : index
    %c0_27 = arith.constant 0 : index
    %37 = vector.load %arg11[%c0_26, %c0_27] : memref<64x32xbf16, #tpu.memory_space<vmem>>, vector<64x32xbf16>
    %cst_28 = arith.constant dense<0.000000e+00> : vector<128x32xf32>
    %38 = tpu.matmul %36, %37, %cst_28 {dimension_numbers = #tpu.dot_dimension_numbers<[1], [0], [0], [1], [0, 0, 1, 1], [], []>} : vector<128x64xbf16>, vector<64x32xbf16>, vector<128x32xf32> -> vector<128x32xf32>
    %39 = arith.addf %26, %38 : vector<128x32xf32>
    %c0_29 = arith.constant 0 : index
    %c0_30 = arith.constant 0 : index
    %40 = vector.load %arg12[%c0_29, %c0_30] : memref<1x32xbf16, #tpu.memory_space<vmem>>, vector<1x32xbf16>
    %41 = arith.extf %40 : vector<1x32xbf16> to vector<1x32xf32>
    %42 = vector.broadcast %41 : vector<1x32xf32> to vector<128x32xf32>
    %43 = arith.addf %39, %42 : vector<128x32xf32>
    %44 = arith.truncf %26 : vector<128x32xf32> to vector<128x32xbf16>
    %45 = arith.truncf %43 : vector<128x32xf32> to vector<128x32xbf16>
    %c0_31 = arith.constant 0 : index
    %c0_32 = arith.constant 0 : index
    %46 = vector.load %arg13[%c0_31, %c0_32] : memref<32x32xbf16, #tpu.memory_space<vmem>>, vector<32x32xbf16>
    %c0_33 = arith.constant 0 : index
    %c0_34 = arith.constant 0 : index
    %47 = vector.load %arg14[%c0_33, %c0_34] : memref<32x64xbf16, #tpu.memory_space<vmem>>, vector<32x64xbf16>
    %c0_35 = arith.constant 0 : index
    %c0_36 = arith.constant 0 : index
    %48 = vector.load %arg15[%c0_35, %c0_36] : memref<32x32xbf16, #tpu.memory_space<vmem>>, vector<32x32xbf16>
    %cst_37 = arith.constant dense<0.000000e+00> : vector<128x32xf32>
    %49 = tpu.matmul %3, %46, %cst_37 {dimension_numbers = #tpu.dot_dimension_numbers<[1], [0], [0], [1], [0, 0, 1, 1], [], []>} : vector<128x32xbf16>, vector<32x32xbf16>, vector<128x32xf32> -> vector<128x32xf32>
    %cst_38 = arith.constant 0.176776692 : f32
    %50 = vector.broadcast %cst_38 : f32 to vector<128x32xf32>
    %51 = arith.mulf %49, %50 : vector<128x32xf32>
    %52 = arith.truncf %51 : vector<128x32xf32> to vector<128x32xbf16>
    %cst_39 = arith.constant dense<0.000000e+00> : vector<128x64xf32>
    %53 = tpu.matmul %45, %47, %cst_39 {dimension_numbers = #tpu.dot_dimension_numbers<[1], [0], [0], [1], [0, 0, 1, 1], [], []>} : vector<128x32xbf16>, vector<32x64xbf16>, vector<128x64xf32> -> vector<128x64xf32>
    %54 = vector.extract_strided_slice %53 {offsets = [0, 0], sizes = [128, 32], strides = [1, 1]} : vector<128x64xf32> to vector<128x32xf32>
    %55 = arith.truncf %54 : vector<128x32xf32> to vector<128x32xbf16>
    %56 = vector.extract_strided_slice %53 {offsets = [0, 32], sizes = [128, 32], strides = [1, 1]} : vector<128x64xf32> to vector<128x32xf32>
    %57 = arith.truncf %56 : vector<128x32xf32> to vector<128x32xbf16>
    %cst_40 = arith.constant dense<0.000000e+00> : vector<128x128xf32>
    %58 = tpu.matmul %52, %55, %cst_40 {dimension_numbers = #tpu.dot_dimension_numbers<[1], [1], [0], [0], [0, 0, 1, 0], [], []>} : vector<128x32xbf16>, vector<128x32xbf16>, vector<128x128xf32> -> vector<128x128xf32>
    %cst_41 = arith.constant dense<0xFF800000> : vector<128xf32>
    %59 = vector.multi_reduction <maximumf>, %58, %cst_41 [1] : vector<128x128xf32> to vector<128xf32>
    %60 = vector.shape_cast %59 : vector<128xf32> to vector<128x1xf32>
    %61 = vector.broadcast %60 : vector<128x1xf32> to vector<128x128xf32>
    %62 = arith.subf %58, %61 : vector<128x128xf32>
    %63 = math.exp %62 : vector<128x128xf32>
    %cst_42 = arith.constant dense<0.000000e+00> : vector<128xf32>
    %64 = vector.multi_reduction <add>, %63, %cst_42 [1] : vector<128x128xf32> to vector<128xf32>
    %65 = vector.shape_cast %64 : vector<128xf32> to vector<128x1xf32>
    %66 = tpu.reciprocal %65 {approx = true} : vector<128x1xf32> -> vector<128x1xf32>
    %67 = vector.broadcast %66 : vector<128x1xf32> to vector<128x128xf32>
    %68 = arith.mulf %63, %67 : vector<128x128xf32>
    %69 = arith.truncf %68 : vector<128x128xf32> to vector<128x128xbf16>
    %cst_43 = arith.constant dense<0.000000e+00> : vector<128x32xf32>
    %70 = tpu.matmul %69, %57, %cst_43 {dimension_numbers = #tpu.dot_dimension_numbers<[1], [0], [0], [1], [0, 0, 1, 1], [], []>} : vector<128x128xbf16>, vector<128x32xbf16>, vector<128x32xf32> -> vector<128x32xf32>
    %71 = arith.truncf %70 : vector<128x32xf32> to vector<128x32xbf16>
    %cst_44 = arith.constant dense<0.000000e+00> : vector<128x32xf32>
    %72 = tpu.matmul %71, %48, %cst_44 {dimension_numbers = #tpu.dot_dimension_numbers<[1], [0], [0], [1], [0, 0, 1, 1], [], []>} : vector<128x32xbf16>, vector<32x32xbf16>, vector<128x32xf32> -> vector<128x32xf32>
    %73 = arith.extf %3 : vector<128x32xbf16> to vector<128x32xf32>
    %74 = arith.addf %72, %73 : vector<128x32xf32>
    %75 = arith.truncf %74 : vector<128x32xf32> to vector<128x32xbf16>
    %c0_45 = arith.constant 0 : index
    %c0_46 = arith.constant 0 : index
    %76 = vector.load %arg16[%c0_45, %c0_46] : memref<32x32xbf16, #tpu.memory_space<vmem>>, vector<32x32xbf16>
    %c0_47 = arith.constant 0 : index
    %c0_48 = arith.constant 0 : index
    %77 = vector.load %arg17[%c0_47, %c0_48] : memref<32x64xbf16, #tpu.memory_space<vmem>>, vector<32x64xbf16>
    %c0_49 = arith.constant 0 : index
    %c0_50 = arith.constant 0 : index
    %78 = vector.load %arg18[%c0_49, %c0_50] : memref<32x32xbf16, #tpu.memory_space<vmem>>, vector<32x32xbf16>
    %cst_51 = arith.constant dense<0.000000e+00> : vector<128x32xf32>
    %79 = tpu.matmul %75, %76, %cst_51 {dimension_numbers = #tpu.dot_dimension_numbers<[1], [0], [0], [1], [0, 0, 1, 1], [], []>} : vector<128x32xbf16>, vector<32x32xbf16>, vector<128x32xf32> -> vector<128x32xf32>
    %cst_52 = arith.constant 0.176776692 : f32
    %80 = vector.broadcast %cst_52 : f32 to vector<128x32xf32>
    %81 = arith.mulf %79, %80 : vector<128x32xf32>
    %82 = arith.truncf %81 : vector<128x32xf32> to vector<128x32xbf16>
    %cst_53 = arith.constant dense<0.000000e+00> : vector<128x64xf32>
    %83 = tpu.matmul %44, %77, %cst_53 {dimension_numbers = #tpu.dot_dimension_numbers<[1], [0], [0], [1], [0, 0, 1, 1], [], []>} : vector<128x32xbf16>, vector<32x64xbf16>, vector<128x64xf32> -> vector<128x64xf32>
    %84 = vector.extract_strided_slice %83 {offsets = [0, 0], sizes = [128, 32], strides = [1, 1]} : vector<128x64xf32> to vector<128x32xf32>
    %85 = arith.truncf %84 : vector<128x32xf32> to vector<128x32xbf16>
    %86 = vector.extract_strided_slice %83 {offsets = [0, 32], sizes = [128, 32], strides = [1, 1]} : vector<128x64xf32> to vector<128x32xf32>
    %87 = arith.truncf %86 : vector<128x32xf32> to vector<128x32xbf16>
    %cst_54 = arith.constant dense<0.000000e+00> : vector<128x128xf32>
    %88 = tpu.matmul %82, %85, %cst_54 {dimension_numbers = #tpu.dot_dimension_numbers<[1], [1], [0], [0], [0, 0, 1, 0], [], []>} : vector<128x32xbf16>, vector<128x32xbf16>, vector<128x128xf32> -> vector<128x128xf32>
    %cst_55 = arith.constant dense<0xFF800000> : vector<128xf32>
    %89 = vector.multi_reduction <maximumf>, %88, %cst_55 [1] : vector<128x128xf32> to vector<128xf32>
    %90 = vector.shape_cast %89 : vector<128xf32> to vector<128x1xf32>
    %91 = vector.broadcast %90 : vector<128x1xf32> to vector<128x128xf32>
    %92 = arith.subf %88, %91 : vector<128x128xf32>
    %93 = math.exp %92 : vector<128x128xf32>
    %cst_56 = arith.constant dense<0.000000e+00> : vector<128xf32>
    %94 = vector.multi_reduction <add>, %93, %cst_56 [1] : vector<128x128xf32> to vector<128xf32>
    %95 = vector.shape_cast %94 : vector<128xf32> to vector<128x1xf32>
    %96 = tpu.reciprocal %95 {approx = true} : vector<128x1xf32> -> vector<128x1xf32>
    %97 = vector.broadcast %96 : vector<128x1xf32> to vector<128x128xf32>
    %98 = arith.mulf %93, %97 : vector<128x128xf32>
    %99 = arith.truncf %98 : vector<128x128xf32> to vector<128x128xbf16>
    %cst_57 = arith.constant dense<0.000000e+00> : vector<128x32xf32>
    %100 = tpu.matmul %99, %87, %cst_57 {dimension_numbers = #tpu.dot_dimension_numbers<[1], [0], [0], [1], [0, 0, 1, 1], [], []>} : vector<128x128xbf16>, vector<128x32xbf16>, vector<128x32xf32> -> vector<128x32xf32>
    %101 = arith.truncf %100 : vector<128x32xf32> to vector<128x32xbf16>
    %cst_58 = arith.constant dense<0.000000e+00> : vector<128x32xf32>
    %102 = tpu.matmul %101, %78, %cst_58 {dimension_numbers = #tpu.dot_dimension_numbers<[1], [0], [0], [1], [0, 0, 1, 1], [], []>} : vector<128x32xbf16>, vector<32x32xbf16>, vector<128x32xf32> -> vector<128x32xf32>
    %103 = arith.addf %72, %102 : vector<128x32xf32>
    %c0_59 = arith.constant 0 : index
    %c0_60 = arith.constant 0 : index
    %104 = vector.load %arg19[%c0_59, %c0_60] : memref<32x4xbf16, #tpu.memory_space<vmem>>, vector<32x4xbf16>
    %105 = arith.truncf %103 : vector<128x32xf32> to vector<128x32xbf16>
    %cst_61 = arith.constant dense<0.000000e+00> : vector<4x128xf32>
    %106 = tpu.matmul %104, %105, %cst_61 {dimension_numbers = #tpu.dot_dimension_numbers<[0], [1], [1], [0], [0, 1, 1, 0], [], []>} : vector<32x4xbf16>, vector<128x32xbf16>, vector<4x128xf32> -> vector<4x128xf32>
    %c0_62 = arith.constant 0 : index
    %c0_63 = arith.constant 0 : index
    %107 = vector.load %arg20[%c0_62, %c0_63] : memref<4x1xbf16, #tpu.memory_space<vmem>>, vector<4x1xbf16>
    %108 = arith.extf %107 : vector<4x1xbf16> to vector<4x1xf32>
    %109 = vector.broadcast %108 : vector<4x1xf32> to vector<4x128xf32>
    %110 = arith.addf %106, %109 : vector<4x128xf32>
    %111 = arith.truncf %110 : vector<4x128xf32> to vector<4x128xbf16>
    %c0_64 = arith.constant 0 : index
    %c0_65 = arith.constant 0 : index
    %c0_66 = arith.constant 0 : index
    %112 = vector.load %arg21[%c0_64, %c0_65, %c0_66] : memref<1x4x128xbf16, #tpu.memory_space<vmem>>, vector<1x4x128xbf16>
    %113 = vector.shape_cast %112 : vector<1x4x128xbf16> to vector<4x128xbf16>
    %114 = vector.shape_cast %111 : vector<4x128xbf16> to vector<1x4x128xbf16>
    tpu.vector_store %arg21[%c0_64, %c0_65, %c0_66], %114 {strides = array<i32>} : memref<1x4x128xbf16, #tpu.memory_space<vmem>>, vector<1x4x128xbf16>,
    return
  }
  func.func @transform_0(%arg0: i32) -> (i32, i32, i32) {
    %c0_i32 = arith.constant 0 : i32
    %c0_i32_0 = arith.constant 0 : i32
    %c0_i32_1 = arith.constant 0 : i32
    return %arg0, %c0_i32, %c0_i32_0 : i32, i32, i32
  }
  func.func @transform_1(%arg0: i32) -> (i32, i32, i32) {
    %c0_i32 = arith.constant 0 : i32
    %c0_i32_0 = arith.constant 0 : i32
    %c0_i32_1 = arith.constant 0 : i32
    return %arg0, %c0_i32, %c0_i32_0 : i32, i32, i32
  }
  func.func @transform_2(%arg0: i32) -> (i32, i32) {
    %c0_i32 = arith.constant 0 : i32
    %c0_i32_0 = arith.constant 0 : i32
    %c0_i32_1 = arith.constant 0 : i32
    return %c0_i32, %c0_i32_0 : i32, i32
  }
  func.func @transform_3(%arg0: i32) -> (i32, i32) {
    %c0_i32 = arith.constant 0 : i32
    %c0_i32_0 = arith.constant 0 : i32
    %c0_i32_1 = arith.constant 0 : i32
    return %c0_i32, %c0_i32_0 : i32, i32
  }
  func.func @transform_4(%arg0: i32) -> (i32, i32) {
    %c0_i32 = arith.constant 0 : i32
    %c0_i32_0 = arith.constant 0 : i32
    %c0_i32_1 = arith.constant 0 : i32
    return %c0_i32, %c0_i32_0 : i32, i32
  }
  func.func @transform_5(%arg0: i32) -> (i32, i32) {
    %c0_i32 = arith.constant 0 : i32
    %c0_i32_0 = arith.constant 0 : i32
    %c0_i32_1 = arith.constant 0 : i32
    return %c0_i32, %c0_i32_0 : i32, i32
  }
  func.func @transform_6(%arg0: i32) -> (i32, i32) {
    %c0_i32 = arith.constant 0 : i32
    %c0_i32_0 = arith.constant 0 : i32
    %c0_i32_1 = arith.constant 0 : i32
    return %c0_i32, %c0_i32_0 : i32, i32
  }
  func.func @transform_7(%arg0: i32) -> (i32, i32) {
    %c0_i32 = arith.constant 0 : i32
    %c0_i32_0 = arith.constant 0 : i32
    %c0_i32_1 = arith.constant 0 : i32
    return %c0_i32, %c0_i32_0 : i32, i32
  }
  func.func @transform_8(%arg0: i32) -> (i32, i32) {
    %c0_i32 = arith.constant 0 : i32
    %c0_i32_0 = arith.constant 0 : i32
    %c0_i32_1 = arith.constant 0 : i32
    return %c0_i32, %c0_i32_0 : i32, i32
  }
  func.func @transform_9(%arg0: i32) -> (i32, i32) {
    %c0_i32 = arith.constant 0 : i32
    %c0_i32_0 = arith.constant 0 : i32
    %c0_i32_1 = arith.constant 0 : i32
    return %c0_i32, %c0_i32_0 : i32, i32
  }
  func.func @transform_10(%arg0: i32) -> (i32, i32) {
    %c0_i32 = arith.constant 0 : i32
    %c0_i32_0 = arith.constant 0 : i32
    %c0_i32_1 = arith.constant 0 : i32
    return %c0_i32, %c0_i32_0 : i32, i32
  }
  func.func @transform_11(%arg0: i32) -> (i32, i32) {
    %c0_i32 = arith.constant 0 : i32
    %c0_i32_0 = arith.constant 0 : i32
    %c0_i32_1 = arith.constant 0 : i32
    return %c0_i32, %c0_i32_0 : i32, i32
  }
  func.func @transform_12(%arg0: i32) -> (i32, i32) {
    %c0_i32 = arith.constant 0 : i32
    %c0_i32_0 = arith.constant 0 : i32
    %c0_i32_1 = arith.constant 0 : i32
    return %c0_i32, %c0_i32_0 : i32, i32
  }
  func.func @transform_13(%arg0: i32) -> (i32, i32) {
    %c0_i32 = arith.constant 0 : i32
    %c0_i32_0 = arith.constant 0 : i32
    %c0_i32_1 = arith.constant 0 : i32
    return %c0_i32, %c0_i32_0 : i32, i32
  }
  func.func @transform_14(%arg0: i32) -> (i32, i32) {
    %c0_i32 = arith.constant 0 : i32
    %c0_i32_0 = arith.constant 0 : i32
    %c0_i32_1 = arith.constant 0 : i32
    return %c0_i32, %c0_i32_0 : i32, i32
  }
  func.func @transform_15(%arg0: i32) -> (i32, i32) {
    %c0_i32 = arith.constant 0 : i32
    %c0_i32_0 = arith.constant 0 : i32
    %c0_i32_1 = arith.constant 0 : i32
    return %c0_i32, %c0_i32_0 : i32, i32
  }
  func.func @transform_16(%arg0: i32) -> (i32, i32) {
    %c0_i32 = arith.constant 0 : i32
    %c0_i32_0 = arith.constant 0 : i32
    %c0_i32_1 = arith.constant 0 : i32
    return %c0_i32, %c0_i32_0 : i32, i32
  }
  func.func @transform_17(%arg0: i32) -> (i32, i32) {
    %c0_i32 = arith.constant 0 : i32
    %c0_i32_0 = arith.constant 0 : i32
    %c0_i32_1 = arith.constant 0 : i32
    return %c0_i32, %c0_i32_0 : i32, i32
  }
  func.func @transform_18(%arg0: i32) -> (i32, i32) {
    %c0_i32 = arith.constant 0 : i32
    %c0_i32_0 = arith.constant 0 : i32
    %c0_i32_1 = arith.constant 0 : i32
    return %c0_i32, %c0_i32_0 : i32, i32
  }
  func.func @transform_19(%arg0: i32) -> (i32, i32) {
    %c0_i32 = arith.constant 0 : i32
    %c0_i32_0 = arith.constant 0 : i32
    %c0_i32_1 = arith.constant 0 : i32
    return %c0_i32, %c0_i32_0 : i32, i32
  }
  func.func @transform_20(%arg0: i32) -> (i32, i32, i32) {
    %c0_i32 = arith.constant 0 : i32
    %c0_i32_0 = arith.constant 0 : i32
    %c0_i32_1 = arith.constant 0 : i32
    return %arg0, %c0_i32, %c0_i32_0 : i32, i32, i32
  }
}

</mosaic_0001>

<bundles_post_ra>
// kernel: ef_forward.1
= control target key start
LH: loop header
LB: loop body
LE: loop exit
PB: predicated region body
PF: predicated region fallthrough
CT: control target
= control target key end

     0   :  { %s4193_s0 = inlined_call_operand.vmem [shape: bf16[2,128,4], index: 0, kind: input, shape index: {}]   ;;  %s4194_s1 = inlined_call_operand.vmem [shape: bf16[2,128,32], index: 1, kind: input, shape index: {}]   ;;  %s4195_s2 = inlined_call_operand.vmem [shape: bf16[4,32], index: 2, kind: input, shape index: {}]   ;;  %s4196_s3 = inlined_call_operand.vmem [shape: bf16[1,32], index: 3, kind: input, shape index: {}]   ;;  %s4197_s4 = inlined_call_operand.vmem [shape: bf16[32,64], index: 4, kind: input, shape index: {}]   ;;  %s4198_s5 = inlined_call_operand.vmem [shape: bf16[1,64], index: 5, kind: input, shape index: {}]   ;;  %s4199_s6 = inlined_call_operand.vmem [shape: bf16[64,32], index: 6, kind: input, shape index: {}]   ;;  %s4200_s7 = inlined_call_operand.vmem [shape: bf16[1,32], index: 7, kind: input, shape index: {}]   ;;  %s4201_s8 = inlined_call_operand.vmem [shape: bf16[32,64], index: 8, kind: input, shape index: {}]   ;;  %s4202_s9 = inlined_call_operand.vmem [shape: bf16[1,64], index: 9, kind: input, shape index: {}]   ;;  %s4203_s10 = inlined_call_operand.vmem [shape: bf16[64,32], index: 10, kind: input, shape index: {}]   ;;  %s4204_s11 = inlined_call_operand.vmem [shape: bf16[1,32], index: 11, kind: input, shape index: {}]   ;;  %s4205_s12 = inlined_call_operand.vmem [shape: bf16[32,32], index: 12, kind: input, shape index: {}]   ;;  %s4206_s13 = inlined_call_operand.vmem [shape: bf16[32,64], index: 13, kind: input, shape index: {}]   ;;  %s4207_s14 = inlined_call_operand.vmem [shape: bf16[32,32], index: 14, kind: input, shape index: {}]   ;;  %s4208_s15 = inlined_call_operand.vmem [shape: bf16[32,32], index: 15, kind: input, shape index: {}]   ;;  %s4209_s16 = inlined_call_operand.vmem [shape: bf16[32,64], index: 16, kind: input, shape index: {}]   ;;  %s4210_s17 = inlined_call_operand.vmem [shape: bf16[32,32], index: 17, kind: input, shape index: {}]   ;;  %s4211_s18 = inlined_call_operand.vmem [shape: bf16[32,4], index: 18, kind: input, shape index: {}]   ;;  %s4212_s19 = inlined_call_operand.vmem [shape: bf16[4,1], index: 19, kind: input, shape index: {}]   ;;  %s4213_s20 = inlined_call_operand.vmem [shape: bf16[2,4,128], index: 20, kind: output, shape index: {}]  }
   0x1   :  { %4215 = sst [smem:[#allocation2_spill]] %s4193_s0 }
   0x2   :  { %4216 = sst [smem:[#allocation3_spill]] %s4194_s1  ;;  %s3436_s1 = smov 0  }
   0x3   :  { %4217 = sst [smem:[#allocation4_spill]] %s4195_s2 }
   0x4   :  { %4218 = sst [smem:[#allocation5_spill]] %s4196_s3 }
   0x5   :  { %4219 = sst [smem:[#allocation6_spill]] %s4197_s4 }
   0x6 LB: > { %s2845_s22 = sadd.s32 4294967295, %s3326_s1   ;;  %p2849_p0 = scmp.ge.s32.totalorder %s3326_s1, 1  ;;  %s3326_s1 = sphi %s3436_s1, %s30_s1  }
   0x7   : > { %p572_p1 = scmp.lt.s32.totalorder %s3326_s1, 3 }
   0x9   : > { %p573_p2 = pnand %p2849_p0, %p572_p1 }
   0xa   : > { %s4220_s2 = sld [smem:[#allocation4_spill]] (!%p573_p2)  ;;  %p634_p3 = scmp.lt.s32.totalorder (!%p573_p2), %s2845_s22, 1 }
   0xb   : > { %576 = sbr.rel (%p573_p2) target bundleno = 3163 (0xc5b), region = 100  ;;  %s4221_s27 = sld [smem:[#allocation2_spill]] (!%p573_p2) }
   0xc   : > { %s4222_s30 = sld [smem:[#allocation6_spill]] (!%p573_p2)  ;;  %s3328_s21 = smov (!%p573_p2), 96  }
   0xd   : > { %s4224_s29 = sld [smem:[#allocation3_spill]] (!%p573_p2) }
  0x10   : > { %v681_v0 = vld [vmem:[%s4220_s2] sm:$0x3]  ;;  %vm750_vm0 = vcmask 1041408   ;;  %s4226_s22 = smov (!%p634_p3, %s2845_s22), 1  ;;  %vm725_vm1 = vcmask 31744   ;;  %s4223_s2 = sld [smem:[#allocation5_spill]] }
  0x11   : > { %v752_v1 = vsel %vm750_vm0, %v681_v0, 0  ;;  %s3130_s25 = sshll.u32 %s4226_s22, 6  ;;  %vm830_vm2 = vcmask 261120   ;;  %v3153_v52 = vld [vmem:[%s4199_s6 + $0x18] sm:$0xff]  ;;  %v3152_v56 = vld [vmem:[%s4199_s6 + $0x10] sm:$0xff]  ;;  %v3151_v57 = vld [vmem:[%s4199_s6 + $0x8] sm:$0xff] }
  0x12   : > { %761 = vmatpush.bf16.msra.mxu0 %v752_v1  ;;  %3174 = vmatpush.bf16.msra.mxu2 %v752_v1  ;;  %s638_s28 = scalar_lea.vmem %s4221_s27, %s3130_s25  ;;  %v3149_v10 = vld [vmem:[%s4222_s30 + $0x8] sm:$0xff]  ;;  %v3148_v11 = vld [vmem:[%s4222_s30] sm:$0xff]  ;;  %vm960_vm3 = vcmask 523264  }
  0x13   : > { %v3132_v2 = vld [vmem:[%s638_s28] sm:$0xff]  ;;  %v3133_v3 = vld [vmem:[%s638_s28 + $0x8] sm:$0xff]  ;;  %v3134_v4 = vld [vmem:[%s638_s28 + $0x10] sm:$0xff]  ;;  %861 = vmatpush.bf16.msra.mxu1 %v3149_v10  ;;  %s3759_s0 = scalar_lea.vmem %s4224_s29, %s3130_s25  ;;  %s2854_s25 = sshll.u32 %s4226_s22, 1 }
  0x14   : > { %v3135_v5 = vld [vmem:[%s638_s28 + $0x18] sm:$0xff]  ;;  %v3136_v7 = vld [vmem:[%s638_s28 + $0x20] sm:$0xff]  ;;  %v3137_v8 = vld [vmem:[%s638_s28 + $0x28] sm:$0xff] }
  0x15   : > { %2887 = vmatmul.msk.bf16.vlgmr.msra.gmra.mxu0 %vm725_vm1, %v3132_v2  ;;  %v3139_v6 = vld [vmem:[%s638_s28 + $0x38] sm:$0xff]  ;;  %v3138_v9 = vld [vmem:[%s638_s28 + $0x30] sm:$0xff]  ;;  %v3150_v58 = vld [vmem:[%s4199_s6] sm:$0xff] }
  0x16   : > { %2894 = vmatmul.msk.bf16.vlgmr.msra.gmra.mxu2 %vm725_vm1, %v3139_v6  ;;  %v682_v12 = vld [vmem:[%s4223_s2] sm:$0x1] }
  0x17   : > { %3175 = vmatpush.bf16.msrb.mxu2 %v3149_v10  ;;  %862 = vmatpush.bf16.msra.mxu1 %v3148_v11  ;;  %v683_v14 = vunpack.c.l.bf16 %v682_v12  ;;  %v815_v59 = vld [vmem:[%s4198_s5] sm:$0x1] }
  0x18   : > { %v816_v60 = vunpack.c.l.bf16 %v815_v59 }
  0x19   : > { %v684_v15 = vperm.slane %v683_v14, 0 }
  0x1a   : > { %v817_v62 = vperm.slane %v816_v60, 0 }
  0x1b   : > { %3176 = vmatpush.bf16.msrb.mxu2 %v3148_v11 }
  0x1f   : > { %989 = vmatpush.bf16.msra.mxu2 %v3153_v52 }
  0x23   : > { %990 = vmatpush.bf16.msra.mxu2 %v3152_v56 }
  0x25   : > { %2888 = vmatmul.msk.bf16.gmra.mxu0 %vm725_vm1, %v3133_v3 }
  0x27   : > { %991 = vmatpush.bf16.msra.mxu2 %v3151_v57 }
  0x2b   : > { %992 = vmatpush.bf16.msra.mxu2 %v3150_v58 }
  0x35   : > { %2889 = vmatmul.msk.bf16.gmra.mxu0 %vm725_vm1, %v3134_v4 }
  0x45   : > { %2890 = vmatmul.msk.bf16.gmra.mxu0 %vm725_vm1, %v3135_v5 }
  0x55   : > { %2891 = vmatmul.msk.bf16.gmra.mxu0 %vm725_vm1, %v3136_v7 }
  0x65   : > { %2892 = vmatmul.msk.bf16.gmra.mxu0 %vm725_vm1, %v3137_v8 }
  0x75   : > { %2893 = vmatmul.msk.bf16.gmra.mxu0 %vm725_vm1, %v3138_v9 }
  0x92   : > { %v763_v13 = vpop.f32.mrf.mxu0 }
  0x93   : > { %v3472_v17 = vadd.f32 %v763_v13, %v684_v15 }
  0x99   : > { %v798_v34 = vpop.f32.mrf.mxu2 }
  0x9a   : > { %v765_v16 = vpop.f32.mrf.mxu0  ;;  %v3500_v37 = vadd.f32 %v798_v34, %v684_v15 }
  0x9b   : > { %v3474_v18 = vadd.f32 %v765_v16, %v684_v15 }
  0x9d   : > { %v803_v19 = vpack.c.bf16 %v3474_v18, %v3472_v17 }
  0x9f   : > { %2903 = vmatmul.msk.bf16.vlgmr.msra.gmra.mxu1 %vm830_vm2, %v803_v19 }
  0xa1   : > { %v800_v38 = vpop.f32.mrf.mxu2 }
  0xa2   : > { %v768_v20 = vpop.f32.mrf.mxu0  ;;  %v3502_v39 = vadd.f32 %v800_v38, %v684_v15 }
  0xa3   : > { %v3479_v22 = vadd.f32 %v768_v20, %v684_v15 }
  0xa4   : > { %v810_v40 = vpack.c.bf16 %v3502_v39, %v3500_v37 }
  0xa6   : > { %2910 = vmatmul.msk.bf16.vlgmr.msrb.gmra.mxu2 %vm830_vm2, %v810_v40 }
  0xaa   : > { %v770_v21 = vpop.f32.mrf.mxu0 }
  0xab   : > { %v3481_v23 = vadd.f32 %v770_v21, %v684_v15 }
  0xad   : > { %v804_v24 = vpack.c.bf16 %v3481_v23, %v3479_v22 }
  0xaf   : > { %2904 = vmatmul.msk.bf16.gmra.mxu1 %vm830_vm2, %v804_v24 }
  0xb2   : > { %v773_v25 = vpop.f32.mrf.mxu0 }
  0xb3   : > { %v3486_v27 = vadd.f32 %v773_v25, %v684_v15 }
  0xba   : > { %v775_v26 = vpop.f32.mrf.mxu0 }
  0xbb   : > { %v3488_v28 = vadd.f32 %v775_v26, %v684_v15 }
  0xbd   : > { %v805_v29 = vpack.c.bf16 %v3488_v28, %v3486_v27 }
  0xbf   : > { %2905 = vmatmul.msk.bf16.gmra.mxu1 %vm830_vm2, %v805_v29 }
  0xc2   : > { %v778_v30 = vpop.f32.mrf.mxu0 }
  0xc3   : > { %v3493_v32 = vadd.f32 %v778_v30, %v684_v15 }
  0xca   : > { %v780_v31 = vpop.f32.mrf.mxu0 }
  0xcb   : > { %v3495_v33 = vadd.f32 %v780_v31, %v684_v15 }
  0xcd   : > { %v806_v35 = vpack.c.bf16 %v3495_v33, %v3493_v32 }
  0xcf   : > { %2906 = vmatmul.msk.bf16.gmra.mxu1 %vm830_vm2, %v806_v35 }
  0xd2   : > { %v783_v36 = vpop.f32.mrf.mxu0 }
  0xd3   : > { %v3507_v42 = vadd.f32 %v783_v36, %v684_v15 }
  0xda   : > { %v785_v41 = vpop.f32.mrf.mxu0 }
  0xdb   : > { %v3509_v43 = vadd.f32 %v785_v41, %v684_v15 }
  0xdd   : > { %v807_v44 = vpack.c.bf16 %v3509_v43, %v3507_v42 }
  0xdf   : > { %2907 = vmatmul.msk.bf16.gmra.mxu1 %vm830_vm2, %v807_v44 }
  0xe2   : > { %v788_v45 = vpop.f32.mrf.mxu0 }
  0xe3   : > { %v3514_v47 = vadd.f32 %v788_v45, %v684_v15 }
  0xea   : > { %v790_v46 = vpop.f32.mrf.mxu0 }
  0xeb   : > { %v3516_v48 = vadd.f32 %v790_v46, %v684_v15 }
  0xed   : > { %v808_v49 = vpack.c.bf16 %v3516_v48, %v3514_v47 }
  0xef   : > { %2908 = vmatmul.msk.bf16.gmra.mxu1 %vm830_vm2, %v808_v49 }
  0xf2   : > { %v793_v50 = vpop.f32.mrf.mxu0 }
  0xf3   : > { %v3524_v53 = vadd.f32 %v793_v50, %v684_v15 }
  0xfa   : > { %v795_v51 = vpop.f32.mrf.mxu0 }
  0xfb   : > { %v3526_v54 = vadd.f32 %v795_v51, %v684_v15 }
  0xfd   : > { %v809_v55 = vpack.c.bf16 %v3526_v54, %v3524_v53 }
  0xff   : > { %2909 = vmatmul.msk.bf16.gmra.mxu1 %vm830_vm2, %v809_v55 }
 0x11c   : > { %v864_v61 = vpop.f32.mrf.mxu1 }
 0x11d   : > { %v865_v63 = vadd.f32 %v864_v61, %v817_v62 }
 0x11f   : > { %v904_v2 = vmax.f32 %v865_v63, 0.0 }
 0x124   : > { %v866_v0 = vpop.f32.mrf.mxu1 }
 0x125   : > { %v867_v1 = vadd.f32 %v866_v0, %v817_v62 }
 0x127   : > { %v905_v3 = vmax.f32 %v867_v1, 0.0 }
 0x129   : > { %v920_v4 = vpack.c.bf16 %v905_v3, %v904_v2  ;;  %v899_v58 = vpop.f32.mrf.mxu2 }
 0x12a   : > { %v900_v2 = vadd.f32 %v899_v58, %v817_v62 }
 0x12b   : > { %2927 = vmatmul.msk.bf16.vlgmr.msra.gmra.mxu2 %vm960_vm3, %v920_v4  ;;  %v3155_v4 = vld [vmem:[%s4201_s8 + $0x8] sm:$0xff] }
 0x12c   : > { %v869_v5 = vpop.f32.mrf.mxu1  ;;  %1126 = vmatpush.bf16.msra.mxu3 %v3155_v4 }
 0x12d   : > { %v870_v6 = vadd.f32 %v869_v5, %v817_v62  ;;  %v918_v5 = vmax.f32 %v900_v2, 0.0 }
 0x12f   : > { %v906_v9 = vmax.f32 %v870_v6, 0.0 }
 0x131   : > { %v901_v1 = vpop.f32.mrf.mxu2 }
 0x132   : > { %v902_v3 = vadd.f32 %v901_v1, %v817_v62 }
 0x134   : > { %v871_v7 = vpop.f32.mrf.mxu1  ;;  %v919_v6 = vmax.f32 %v902_v3, 0.0 }
 0x135   : > { %v872_v8 = vadd.f32 %v871_v7, %v817_v62  ;;  %v3154_v7 = vld [vmem:[%s4201_s8] sm:$0xff] }
 0x136   : > { %1127 = vmatpush.bf16.msra.mxu3 %v3154_v7 }
 0x137   : > { %v907_v10 = vmax.f32 %v872_v8, 0.0  ;;  %v927_v8 = vpack.c.bf16 %v919_v6, %v918_v5 }
 0x139   : > { %v921_v11 = vpack.c.bf16 %v907_v10, %v906_v9 }
 0x13b   : > { %2928 = vmatmul.msk.bf16.gmra.mxu2 %vm960_vm3, %v921_v11 }
 0x13c   : > { %v874_v12 = vpop.f32.mrf.mxu1 }
 0x13d   : > { %v875_v13 = vadd.f32 %v874_v12, %v817_v62 }
 0x13f   : > { %v908_v16 = vmax.f32 %v875_v13, 0.0 }
 0x144   : > { %v876_v14 = vpop.f32.mrf.mxu1 }
 0x145   : > { %v877_v15 = vadd.f32 %v876_v14, %v817_v62 }
 0x147   : > { %v909_v19 = vmax.f32 %v877_v15, 0.0 }
 0x149   : > { %v922_v20 = vpack.c.bf16 %v909_v19, %v908_v16 }
 0x14b   : > { %2929 = vmatmul.msk.bf16.gmra.mxu2 %vm960_vm3, %v922_v20 }
 0x14c   : > { %v879_v21 = vpop.f32.mrf.mxu1 }
 0x14d   : > { %v880_v24 = vadd.f32 %v879_v21, %v817_v62 }
 0x14f   : > { %v910_v29 = vmax.f32 %v880_v24, 0.0 }
 0x154   : > { %v881_v25 = vpop.f32.mrf.mxu1 }
 0x155   : > { %v882_v26 = vadd.f32 %v881_v25, %v817_v62 }
 0x157   : > { %v911_v30 = vmax.f32 %v882_v26, 0.0 }
 0x159   : > { %v923_v31 = vpack.c.bf16 %v911_v30, %v910_v29 }
 0x15b   : > { %2930 = vmatmul.msk.bf16.gmra.mxu2 %vm960_vm3, %v923_v31 }
 0x15c   : > { %v884_v34 = vpop.f32.mrf.mxu1 }
 0x15d   : > { %v885_v35 = vadd.f32 %v884_v34, %v817_v62 }
 0x15f   : > { %v912_v40 = vmax.f32 %v885_v35, 0.0 }
 0x164   : > { %v886_v36 = vpop.f32.mrf.mxu1 }
 0x165   : > { %v887_v38 = vadd.f32 %v886_v36, %v817_v62 }
 0x167   : > { %v913_v41 = vmax.f32 %v887_v38, 0.0 }
 0x169   : > { %v924_v44 = vpack.c.bf16 %v913_v41, %v912_v40 }
 0x16b   : > { %2931 = vmatmul.msk.bf16.gmra.mxu2 %vm960_vm3, %v924_v44 }
 0x16c   : > { %v889_v45 = vpop.f32.mrf.mxu1 }
 0x16d   : > { %v890_v46 = vadd.f32 %v889_v45, %v817_v62 }
 0x16f   : > { %v914_v51 = vmax.f32 %v890_v46, 0.0 }
 0x174   : > { %v891_v49 = vpop.f32.mrf.mxu1 }
 0x175   : > { %v892_v50 = vadd.f32 %v891_v49, %v817_v62 }
 0x177   : > { %v915_v52 = vmax.f32 %v892_v50, 0.0 }
 0x179   : > { %v925_v55 = vpack.c.bf16 %v915_v52, %v914_v51 }
 0x17b   : > { %2932 = vmatmul.msk.bf16.gmra.mxu2 %vm960_vm3, %v925_v55 }
 0x17c   : > { %v894_v56 = vpop.f32.mrf.mxu1 }
 0x17d   : > { %v895_v57 = vadd.f32 %v894_v56, %v817_v62 }
 0x17f   : > { %v916_v61 = vmax.f32 %v895_v57, 0.0 }
 0x184   : > { %v896_v59 = vpop.f32.mrf.mxu1 }
 0x185   : > { %v897_v60 = vadd.f32 %v896_v59, %v817_v62  ;;  %v1050_v62 = vld [vmem:[%s4200_s7] sm:$0x1] }
 0x186   : > { %v1051_v10 = vunpack.c.l.bf16 %v1050_v62 }
 0x187   : > { %v917_v63 = vmax.f32 %v897_v60, 0.0 }
 0x188   : > { %v3561_v12 = vperm.slane %v1051_v10, 0 }
 0x189   : > { %v926_v0 = vpack.c.bf16 %v917_v63, %v916_v61 }
 0x18b   : > { %2933 = vmatmul.msk.bf16.gmra.mxu2 %vm960_vm3, %v926_v0 }
 0x19b   : > { %2934 = vmatmul.msk.bf16.gmra.mxu2 %vm960_vm3, %v927_v8  ;;  %v3156_v8 = vld [vmem:[%s4203_s10] sm:$0xff] }
 0x1ae   : > { %v994_v9 = vpop.f32.mrf.mxu2 }
 0x1af   : > { %v1034_v11 = vadd.f32 %v994_v9, %v3472_v17 }
 0x1b1   : > { %v3565_v15 = vadd.f32 %v3561_v12, %v1034_v11 }
 0x1b6   : > { %v996_v13 = vpop.f32.mrf.mxu2 }
 0x1b7   : > { %v1035_v14 = vadd.f32 %v996_v13, %v3474_v18 }
 0x1b9   : > { %v3568_v16 = vadd.f32 %v3561_v12, %v1035_v14 }
 0x1bb   : > { %v3572_v19 = vpack.c.bf16 %v3568_v16, %v3565_v15 }
 0x1bd   : > { %2943 = vmatmul.msk.bf16.vlgmr.msra.gmra.mxu3 %vm830_vm2, %v3572_v19 }
 0x1be   : > { %v999_v20 = vpop.f32.mrf.mxu2 }
 0x1bf   : > { %v1036_v17 = vadd.f32 %v999_v20, %v3479_v22 }
 0x1c1   : > { %v3579_v18 = vadd.f32 %v3561_v12, %v1036_v17 }
 0x1c6   : > { %v1001_v21 = vpop.f32.mrf.mxu2 }
 0x1c7   : > { %v1037_v24 = vadd.f32 %v1001_v21, %v3481_v23 }
 0x1c9   : > { %v3582_v25 = vadd.f32 %v3561_v12, %v1037_v24 }
 0x1cb   : > { %v3586_v26 = vpack.c.bf16 %v3582_v25, %v3579_v18 }
 0x1cd   : > { %2944 = vmatmul.msk.bf16.gmra.mxu3 %vm830_vm2, %v3586_v26 }
 0x1ce   : > { %v1004_v29 = vpop.f32.mrf.mxu2 }
 0x1cf   : > { %v1038_v30 = vadd.f32 %v1004_v29, %v3486_v27 }
 0x1d1   : > { %v3593_v23 = vadd.f32 %v3561_v12, %v1038_v30 }
 0x1d6   : > { %v1006_v22 = vpop.f32.mrf.mxu2 }
 0x1d7   : > { %v1039_v31 = vadd.f32 %v1006_v22, %v3488_v28 }
 0x1d9   : > { %v3596_v34 = vadd.f32 %v3561_v12, %v1039_v31 }
 0x1db   : > { %v3600_v35 = vpack.c.bf16 %v3596_v34, %v3593_v23 }
 0x1dd   : > { %2945 = vmatmul.msk.bf16.gmra.mxu3 %vm830_vm2, %v3600_v35 }
 0x1de   : > { %v1009_v36 = vpop.f32.mrf.mxu2 }
 0x1df   : > { %v1040_v38 = vadd.f32 %v1009_v36, %v3493_v32 }
 0x1e1   : > { %v3607_v28 = vadd.f32 %v3561_v12, %v1040_v38 }
 0x1e6   : > { %v1011_v27 = vpop.f32.mrf.mxu2 }
 0x1e7   : > { %v1041_v40 = vadd.f32 %v1011_v27, %v3495_v33 }
 0x1e9   : > { %v3610_v41 = vadd.f32 %v3561_v12, %v1041_v40 }
 0x1eb   : > { %v3614_v44 = vpack.c.bf16 %v3610_v41, %v3607_v28 }
 0x1ed   : > { %2946 = vmatmul.msk.bf16.gmra.mxu3 %vm830_vm2, %v3614_v44 }
 0x1ee   : > { %v1014_v45 = vpop.f32.mrf.mxu2 }
 0x1ef   : > { %v1042_v46 = vadd.f32 %v1014_v45, %v3507_v42  ;;  %v3159_v42 = vld [vmem:[%s4203_s10 + $0x18] sm:$0xff] }
 0x1f0   : > { %1253 = vmatpush.bf16.msrb.mxu0 %v3159_v42 }
 0x1f1   : > { %v3621_v33 = vadd.f32 %v3561_v12, %v1042_v46 }
 0x1f6   : > { %v1016_v32 = vpop.f32.mrf.mxu2 }
 0x1f7   : > { %v1043_v49 = vadd.f32 %v1016_v32, %v3509_v43 }
 0x1f9   : > { %v3624_v50 = vadd.f32 %v3561_v12, %v1043_v49 }
 0x1fb   : > { %v3628_v51 = vpack.c.bf16 %v3624_v50, %v3621_v33 }
 0x1fd   : > { %2947 = vmatmul.msk.bf16.gmra.mxu3 %vm830_vm2, %v3628_v51 }
 0x1fe   : > { %v1019_v52 = vpop.f32.mrf.mxu2 }
 0x1ff   : > { %v1044_v43 = vadd.f32 %v1019_v52, %v3514_v47  ;;  %v3158_v47 = vld [vmem:[%s4203_s10 + $0x10] sm:$0xff] }
 0x200   : > { %1254 = vmatpush.bf16.msrb.mxu0 %v3158_v47 }
 0x201   : > { %v3638_v57 = vadd.f32 %v3561_v12, %v1044_v43 }
 0x206   : > { %v1021_v55 = vpop.f32.mrf.mxu2 }
 0x207   : > { %v1045_v56 = vadd.f32 %v1021_v55, %v3516_v48 }
 0x209   : > { %v3641_v58 = vadd.f32 %v3561_v12, %v1045_v56 }
 0x20b   : > { %v3645_v59 = vpack.c.bf16 %v3641_v58, %v3638_v57 }
 0x20d   : > { %2948 = vmatmul.msk.bf16.gmra.mxu3 %vm830_vm2, %v3645_v59 }
 0x20e   : > { %v1024_v60 = vpop.f32.mrf.mxu2 }
 0x20f   : > { %v1046_v48 = vadd.f32 %v1024_v60, %v3524_v53 }
 0x211   : > { %v3655_v0 = vadd.f32 %v3561_v12, %v1046_v48  ;;  %v3163_v48 = vld [vmem:[%s4206_s13 + $0x8] sm:$0xff] }
 0x212   : > { %1544 = vmatpush.bf16.msrb.mxu3 %v3163_v48 }
 0x216   : > { %v1026_v61 = vpop.f32.mrf.mxu2 }
 0x217   : > { %v1047_v63 = vadd.f32 %v1026_v61, %v3526_v54  ;;  %v3157_v54 = vld [vmem:[%s4203_s10 + $0x8] sm:$0xff] }
 0x218   : > { %1255 = vmatpush.bf16.msrb.mxu0 %v3157_v54 }
 0x219   : > { %v3658_v1 = vadd.f32 %v3561_v12, %v1047_v63 }
 0x21b   : > { %v3662_v2 = vpack.c.bf16 %v3658_v1, %v3655_v0 }
 0x21c   : > { %1256 = vmatpush.bf16.msrb.mxu0 %v3156_v8 }
 0x21d   : > { %2949 = vmatmul.msk.bf16.gmra.mxu3 %vm830_vm2, %v3662_v2 }
 0x21e   : > { %v1029_v3 = vpop.f32.mrf.mxu2 }
 0x21f   : > { %v1048_v4 = vadd.f32 %v1029_v3, %v3500_v37 }
 0x221   : > { %v3672_v6 = vadd.f32 %v3561_v12, %v1048_v4 }
 0x226   : > { %v1031_v53 = vpop.f32.mrf.mxu2 }
 0x227   : > { %v1049_v5 = vadd.f32 %v1031_v53, %v3502_v39  ;;  %v1081_v39 = vld [vmem:[%s4202_s9] sm:$0x1] }
 0x228   : > { %v1082_v9 = vunpack.c.l.bf16 %v1081_v39 }
 0x229   : > { %v3675_v7 = vadd.f32 %v3561_v12, %v1049_v5 }
 0x22a   : > { %v3689_v10 = vperm.slane %v1082_v9, 0 }
 0x22b   : > { %v3682_v37 = vpack.c.bf16 %v3675_v7, %v3672_v6 }
 0x22d   : > { %2950 = vmatmul.msk.bf16.gmra.mxu3 %vm830_vm2, %v3682_v37 }
 0x240   : > { %v1129_v62 = vpop.f32.mrf.mxu3 }
 0x241   : > { %v1130_v11 = vadd.f32 %v1129_v62, %v3689_v10 }
 0x243   : > { %v1169_v14 = vmax.f32 %v1130_v11, 0.0 }
 0x248   : > { %v1131_v12 = vpop.f32.mrf.mxu3 }
 0x249   : > { %v1132_v13 = vadd.f32 %v1131_v12, %v3689_v10 }
 0x24b   : > { %v1170_v20 = vmax.f32 %v1132_v13, 0.0 }
 0x24d   : > { %v1185_v17 = vpack.c.bf16 %v1170_v20, %v1169_v14 }
 0x24f   : > { %2967 = vmatmul.msk.bf16.vlgmr.msrb.gmra.mxu0 %vm960_vm3, %v1185_v17 }
 0x250   : > { %v1134_v21 = vpop.f32.mrf.mxu3 }
 0x251   : > { %v1135_v24 = vadd.f32 %v1134_v21, %v3689_v10 }
 0x253   : > { %v1171_v22 = vmax.f32 %v1135_v24, 0.0 }
 0x258   : > { %v1136_v29 = vpop.f32.mrf.mxu3 }
 0x259   : > { %v1137_v30 = vadd.f32 %v1136_v29, %v3689_v10 }
 0x25b   : > { %v1172_v31 = vmax.f32 %v1137_v30, 0.0 }
 0x25d   : > { %v1186_v36 = vpack.c.bf16 %v1172_v31, %v1171_v22  ;;  %v3162_v31 = vld [vmem:[%s4206_s13] sm:$0xff] }
 0x25e   : > { %1545 = vmatpush.bf16.msrb.mxu3 %v3162_v31 }
 0x25f   : > { %2968 = vmatmul.msk.bf16.gmra.mxu0 %vm960_vm3, %v1186_v36 }
 0x260   : > { %v1139_v38 = vpop.f32.mrf.mxu3 }
 0x261   : > { %v1140_v27 = vadd.f32 %v1139_v38, %v3689_v10 }
 0x263   : > { %v1173_v46 = vmax.f32 %v1140_v27, 0.0 }
 0x268   : > { %v1141_v40 = vpop.f32.mrf.mxu3 }
 0x269   : > { %v1142_v45 = vadd.f32 %v1141_v40, %v3689_v10 }
 0x26b   : > { %v1174_v32 = vmax.f32 %v1142_v45, 0.0 }
 0x26d   : > { %v1187_v49 = vpack.c.bf16 %v1174_v32, %v1173_v46 }
 0x26f   : > { %2969 = vmatmul.msk.bf16.gmra.mxu0 %vm960_vm3, %v1187_v49  ;;  %v1314_v49 = vld [vmem:[%s4204_s11] sm:$0x1] }
 0x270   : > { %v1144_v52 = vpop.f32.mrf.mxu3 }
 0x271   : > { %v1145_v42 = vadd.f32 %v1144_v52, %v3689_v10  ;;  %v1315_v52 = vunpack.c.l.bf16 %v1314_v49 }
 0x273   : > { %v1175_v56 = vmax.f32 %v1145_v42, 0.0 }
 0x278   : > { %v1146_v43 = vpop.f32.mrf.mxu3 }
 0x279   : > { %v1147_v55 = vadd.f32 %v1146_v43, %v3689_v10  ;;  %v1316_v43 = vperm.slane %v1315_v52, 0 }
 0x27b   : > { %v1176_v47 = vmax.f32 %v1147_v55, 0.0 }
 0x27d   : > { %v1188_v60 = vpack.c.bf16 %v1176_v47, %v1175_v56 }
 0x27f   : > { %2970 = vmatmul.msk.bf16.gmra.mxu0 %vm960_vm3, %v1188_v60 }
 0x280   : > { %v1149_v61 = vpop.f32.mrf.mxu3 }
 0x281   : > { %v1150_v63 = vadd.f32 %v1149_v61, %v3689_v10 }
 0x283   : > { %v1177_v53 = vmax.f32 %v1150_v63, 0.0 }
 0x288   : > { %v1151_v3 = vpop.f32.mrf.mxu3 }
 0x289   : > { %v1152_v4 = vadd.f32 %v1151_v3, %v3689_v10 }
 0x28b   : > { %v1178_v54 = vmax.f32 %v1152_v4, 0.0 }
 0x28d   : > { %v1189_v5 = vpack.c.bf16 %v1178_v54, %v1177_v53 }
 0x28f   : > { %2971 = vmatmul.msk.bf16.gmra.mxu0 %vm960_vm3, %v1189_v5 }
 0x290   : > { %v1154_v8 = vpop.f32.mrf.mxu3 }
 0x291   : > { %v1155_v39 = vadd.f32 %v1154_v8, %v3689_v10 }
 0x293   : > { %v1179_v11 = vmax.f32 %v1155_v39, 0.0 }
 0x298   : > { %v1156_v9 = vpop.f32.mrf.mxu3 }
 0x299   : > { %v1157_v62 = vadd.f32 %v1156_v9, %v3689_v10 }
 0x29b   : > { %v1180_v12 = vmax.f32 %v1157_v62, 0.0 }
 0x29d   : > { %v1190_v13 = vpack.c.bf16 %v1180_v12, %v1179_v11 }
 0x29f   : > { %2972 = vmatmul.msk.bf16.gmra.mxu0 %vm960_vm3, %v1190_v13 }
 0x2a0   : > { %v1159_v14 = vpop.f32.mrf.mxu3 }
 0x2a1   : > { %v1160_v20 = vadd.f32 %v1159_v14, %v3689_v10 }
 0x2a3   : > { %v1181_v24 = vmax.f32 %v1160_v20, 0.0 }
 0x2a8   : > { %v1161_v17 = vpop.f32.mrf.mxu3 }
 0x2a9   : > { %v1162_v21 = vadd.f32 %v1161_v17, %v3689_v10 }
 0x2ab   : > { %v1182_v29 = vmax.f32 %v1162_v21, 0.0 }
 0x2ad   : > { %v1191_v30 = vpack.c.bf16 %v1182_v29, %v1181_v24 }
 0x2af   : > { %2973 = vmatmul.msk.bf16.gmra.mxu0 %vm960_vm3, %v1191_v30 }
 0x2b0   : > { %v1164_v22 = vpop.f32.mrf.mxu3 }
 0x2b1   : > { %v1165_v36 = vadd.f32 %v1164_v22, %v3689_v10 }
 0x2b3   : > { %v1183_v40 = vmax.f32 %v1165_v36, 0.0 }
 0x2b8   : > { %v1166_v38 = vpop.f32.mrf.mxu3 }
 0x2b9   : > { %v1167_v27 = vadd.f32 %v1166_v38, %v3689_v10 }
 0x2bb   : > { %v1184_v45 = vmax.f32 %v1167_v27, 0.0 }
 0x2bd   : > { %v1192_v46 = vpack.c.bf16 %v1184_v45, %v1183_v40 }
 0x2bf   : > { %2974 = vmatmul.msk.bf16.gmra.mxu0 %vm960_vm3, %v1192_v46 }
 0x2cc   : > { %v1258_v32 = vpop.f32.mrf.mxu0 }
 0x2cd   : > { %v1298_v42 = vadd.f32 %v1258_v32, %v3565_v15 }
 0x2cf   : > { %v1317_v47 = vadd.f32 %v1316_v43, %v1298_v42 }
 0x2d4   : > { %v1260_v55 = vpop.f32.mrf.mxu0 }
 0x2d5   : > { %v1299_v56 = vadd.f32 %v1260_v55, %v3568_v16 }
 0x2d7   : > { %v1318_v60 = vadd.f32 %v1316_v43, %v1299_v56 }
 0x2d9   : > { %v1333_v10 = vpack.c.bf16 %v1318_v60, %v1317_v47  ;;  %v3160_v60 = vld [vmem:[%s4205_s12] sm:$0xff] }
 0x2db   : > { %3031 = vmatmul.msk.bf16.vlgmr.msrb.gmra.mxu3 %vm830_vm2, %v1333_v10 }
 0x2dc   : > { %v1263_v48 = vpop.f32.mrf.mxu0 }
 0x2dd   : > { %v1300_v61 = vadd.f32 %v1263_v48, %v3579_v18 }
 0x2df   : > { %v1319_v4 = vadd.f32 %v1316_v43, %v1300_v61 }
 0x2e4   : > { %v1265_v63 = vpop.f32.mrf.mxu0 }
 0x2e5   : > { %v1301_v3 = vadd.f32 %v1265_v63, %v3582_v25 }
 0x2e7   : > { %v1320_v53 = vadd.f32 %v1316_v43, %v1301_v3 }
 0x2e9   : > { %v1334_v54 = vpack.c.bf16 %v1320_v53, %v1319_v4 }
 0x2eb   : > { %3032 = vmatmul.msk.bf16.gmra.mxu3 %vm830_vm2, %v1334_v54 }
 0x2ec   : > { %v1268_v15 = vpop.f32.mrf.mxu0 }
 0x2ed   : > { %v1302_v5 = vadd.f32 %v1268_v15, %v3593_v23 }
 0x2ef   : > { %v1321_v39 = vadd.f32 %v1316_v43, %v1302_v5 }
 0x2f4   : > { %v1270_v16 = vpop.f32.mrf.mxu0 }
 0x2f5   : > { %v1303_v8 = vadd.f32 %v1270_v16, %v3596_v34 }
 0x2f7   : > { %v1322_v9 = vadd.f32 %v1316_v43, %v1303_v8 }
 0x2f9   : > { %v1335_v62 = vpack.c.bf16 %v1322_v9, %v1321_v39 }
 0x2fb   : > { %3033 = vmatmul.msk.bf16.gmra.mxu3 %vm830_vm2, %v1335_v62 }
 0x2fc   : > { %v1273_v18 = vpop.f32.mrf.mxu0 }
 0x2fd   : > { %v1304_v11 = vadd.f32 %v1273_v18, %v3607_v28 }
 0x2ff   : > { %v1323_v13 = vadd.f32 %v1316_v43, %v1304_v11 }
 0x304   : > { %v1275_v25 = vpop.f32.mrf.mxu0 }
 0x305   : > { %v1305_v12 = vadd.f32 %v1275_v25, %v3610_v41 }
 0x307   : > { %v1324_v14 = vadd.f32 %v1316_v43, %v1305_v12 }
 0x309   : > { %v1336_v20 = vpack.c.bf16 %v1324_v14, %v1323_v13  ;;  %v3141_v13 = vld [vmem:[%s3759_s0 + $0x8] sm:$0xff] }
 0x30b   : > { %3034 = vmatmul.msk.bf16.gmra.mxu3 %vm830_vm2, %v1336_v20 }
 0x30c   : > { %v1278_v23 = vpop.f32.mrf.mxu0 }
 0x30d   : > { %v1306_v17 = vadd.f32 %v1278_v23, %v3621_v33  ;;  %v3142_v23 = vld [vmem:[%s3759_s0 + $0x10] sm:$0xff] }
 0x30f   : > { %v1325_v24 = vadd.f32 %v1316_v43, %v1306_v17 }
 0x314   : > { %v1280_v34 = vpop.f32.mrf.mxu0 }
 0x315   : > { %v1307_v21 = vadd.f32 %v1280_v34, %v3624_v50 }
 0x317   : > { %v1326_v29 = vadd.f32 %v1316_v43, %v1307_v21 }
 0x319   : > { %v1337_v30 = vpack.c.bf16 %v1326_v29, %v1325_v24  ;;  %v3143_v29 = vld [vmem:[%s3759_s0 + $0x18] sm:$0xff] }
 0x31b   : > { %3035 = vmatmul.msk.bf16.gmra.mxu3 %vm830_vm2, %v1337_v30 }
 0x31c   : > { %v1283_v28 = vpop.f32.mrf.mxu0 }
 0x31d   : > { %v1308_v22 = vadd.f32 %v1283_v28, %v3638_v57 }
 0x31f   : > { %v1327_v36 = vadd.f32 %v1316_v43, %v1308_v22 }
 0x324   : > { %v1285_v41 = vpop.f32.mrf.mxu0 }
 0x325   : > { %v1309_v31 = vadd.f32 %v1285_v41, %v3641_v58  ;;  %v3161_v58 = vld [vmem:[%s4205_s12 + $0x8] sm:$0xff] }
 0x326   : > { %1435 = vmatpush.bf16.msrb.mxu1 %v3161_v58 }
 0x327   : > { %v1328_v38 = vadd.f32 %v1316_v43, %v1309_v31 }
 0x329   : > { %v1338_v27 = vpack.c.bf16 %v1328_v38, %v1327_v36  ;;  %v3144_v38 = vld [vmem:[%s3759_s0 + $0x20] sm:$0xff] }
 0x32a   : > { %1436 = vmatpush.bf16.msrb.mxu1 %v3160_v60  ;;  %v3146_v60 = vld [vmem:[%s3759_s0 + $0x30] sm:$0xff] }
 0x32b   : > { %3036 = vmatmul.msk.bf16.gmra.mxu3 %vm830_vm2, %v1338_v27 }
 0x32c   : > { %v1288_v33 = vpop.f32.mrf.mxu0 }
 0x32d   : > { %v1310_v40 = vadd.f32 %v1288_v33, %v3655_v0 }
 0x32f   : > { %v1329_v46 = vadd.f32 %v1316_v43, %v1310_v40 }
 0x334   : > { %v1290_v50 = vpop.f32.mrf.mxu0 }
 0x335   : > { %v1311_v45 = vadd.f32 %v1290_v50, %v3658_v1 }
 0x337   : > { %v1330_v32 = vadd.f32 %v1316_v43, %v1311_v45 }
 0x339   : > { %v1339_v49 = vpack.c.bf16 %v1330_v32, %v1329_v46  ;;  %v3145_v32 = vld [vmem:[%s3759_s0 + $0x28] sm:$0xff] }
 0x33b   : > { %3037 = vmatmul.msk.bf16.gmra.mxu3 %vm830_vm2, %v1339_v49 }
 0x33c   : > { %v1293_v57 = vpop.f32.mrf.mxu0 }
 0x33d   : > { %v1312_v52 = vadd.f32 %v1293_v57, %v3672_v6  ;;  %v3140_v6 = vld [vmem:[%s3759_s0] sm:$0xff] }
 0x33e   : > { %3015 = vmatmul.msk.bf16.vlgmr.msrb.gmra.mxu1 %vm830_vm2, %v3140_v6 }
 0x33f   : > { %v1331_v55 = vadd.f32 %v1316_v43, %v1312_v52 }
 0x344   : > { %v1295_v42 = vpop.f32.mrf.mxu0 }
 0x345   : > { %v1313_v0 = vadd.f32 %v1295_v42, %v3675_v7 }
 0x347   : > { %v1332_v56 = vadd.f32 %v1316_v43, %v1313_v0 }
 0x349   : > { %v1340_v1 = vpack.c.bf16 %v1332_v56, %v1331_v55 }
 0x34b   : > { %3038 = vmatmul.msk.bf16.gmra.mxu3 %vm830_vm2, %v1340_v1 }
 0x34e   : > { %3016 = vmatmul.msk.bf16.gmra.mxu1 %vm830_vm2, %v3141_v13 }
 0x35e   : > { %v1547_v47 = vpop.f32.mrf.mxu3  ;;  %3017 = vmatmul.msk.bf16.gmra.mxu1 %vm830_vm2, %v3142_v23 }
 0x366   : > { %v1549_v7 = vpop.f32.mrf.mxu3 }
 0x367   : > { %v1587_v41 = vpack.c.bf16 %v1549_v7, %v1547_v47 }
 0x369   : > { %v1620_v36 = vsel %vm830_vm2, %v1587_v41, 0 }
 0x36e   : > { %v1552_v43 = vpop.f32.mrf.mxu3  ;;  %3018 = vmatmul.msk.bf16.gmra.mxu1 %vm830_vm2, %v3143_v29 }
 0x376   : > { %v1554_v10 = vpop.f32.mrf.mxu3 }
 0x377   : > { %v1588_v30 = vpack.c.bf16 %v1554_v10, %v1552_v43  ;;  %v3147_v10 = vld [vmem:[%s3759_s0 + $0x38] sm:$0xff] }
 0x379   : > { %v1623_v22 = vsel %vm830_vm2, %v1588_v30, 0 }
 0x37e   : > { %v1557_v48 = vpop.f32.mrf.mxu3  ;;  %3019 = vmatmul.msk.bf16.gmra.mxu1 %vm830_vm2, %v3144_v38 }
 0x386   : > { %v1559_v61 = vpop.f32.mrf.mxu3 }
 0x387   : > { %v1589_v21 = vpack.c.bf16 %v1559_v61, %v1557_v48 }
 0x389   : > { %v1626_v24 = vsel %vm830_vm2, %v1589_v21, 0 }
 0x38e   : > { %v1562_v63 = vpop.f32.mrf.mxu3  ;;  %3020 = vmatmul.msk.bf16.gmra.mxu1 %vm830_vm2, %v3145_v32 }
 0x396   : > { %v1564_v3 = vpop.f32.mrf.mxu3 }
 0x397   : > { %v3774_v17 = vpack.c.bf16 %v1564_v3, %v1562_v63 }
 0x399   : > { %v1629_v34 = vsel %vm830_vm2, %v3774_v17, 0 }
 0x39e   : > { %v1567_v4 = vpop.f32.mrf.mxu3  ;;  %3021 = vmatmul.msk.bf16.gmra.mxu1 %vm830_vm2, %v3146_v60 }
 0x3a6   : > { %v1569_v53 = vpop.f32.mrf.mxu3 }
 0x3a7   : > { %v1591_v54 = vpack.c.bf16 %v1569_v53, %v1567_v4 }
 0x3a9   : > { %1860 = vrot.lane.b32.xlu2 %v1591_v54, %s3328_s21  ;;  %v1632_v20 = vsel %vm830_vm2, %v1591_v54, 0 }
 0x3ae   : > { %v1572_v15 = vpop.f32.mrf.mxu3  ;;  %3022 = vmatmul.msk.bf16.gmra.mxu1 %vm830_vm2, %v3147_v10 }
 0x3b6   : > { %v1574_v5 = vpop.f32.mrf.mxu3 }
 0x3b7   : > { %v1592_v16 = vpack.c.bf16 %v1574_v5, %v1572_v15 }
 0x3b9   : > { %1862 = vrot.lane.b32.xlu2 %v1592_v16, %s3328_s21  ;;  %v1635_v14 = vsel %vm830_vm2, %v1592_v16, 0 }
 0x3bb   : > { %v1438_v28 = vpop.f32.mrf.mxu1 }
 0x3bc   : > { %v1478_v27 = vmul.f32 0.17677669, %v1438_v28 }
 0x3be   : > { %v1577_v8 = vpop.f32.mrf.mxu3 }
 0x3c3   : > { %v1440_v31 = vpop.f32.mrf.mxu1 }
 0x3c4   : > { %v1479_v33 = vmul.f32 0.17677669, %v1440_v31 }
 0x3c6   : > { %v1579_v39 = vpop.f32.mrf.mxu3  ;;  %v1494_v40 = vpack.c.bf16 %v1479_v33, %v1478_v27 }
 0x3c7   : > { %v1593_v9 = vpack.c.bf16 %v1579_v39, %v1577_v8 }
 0x3c9   : > { %1864 = vrot.lane.b32.xlu1 %v1593_v9, %s3328_s21  ;;  %v1638_v12 = vsel %vm830_vm2, %v1593_v9, 0 }
 0x3cb   : > { %v1443_v57 = vpop.f32.mrf.mxu1 }
 0x3cc   : > { %v1480_v58 = vmul.f32 0.17677669, %v1443_v57 }
 0x3ce   : > { %v1582_v62 = vpop.f32.mrf.mxu3 }
 0x3d3   : > { %v1445_v52 = vpop.f32.mrf.mxu1 }
 0x3d4   : > { %v1481_v42 = vmul.f32 0.17677669, %v1445_v52 }
 0x3d6   : > { %v1584_v18 = vpop.f32.mrf.mxu3  ;;  %v1495_v0 = vpack.c.bf16 %v1481_v42, %v1480_v58 }
 0x3d7   : > { %v1594_v11 = vpack.c.bf16 %v1584_v18, %v1582_v62 }
 0x3d9   : > { %1866 = vrot.lane.b32.xlu1 %v1594_v11, %s3328_s21  ;;  %v1641_v25 = vsel %vm830_vm2, %v1594_v11, 0 }
 0x3da   : > { %1643 = vmatpush.bf16.xpose.msrb.mxu2 %v1641_v25 }
 0x3db   : > { %v1448_v55 = vpop.f32.mrf.mxu1 }
 0x3dc   : > { %v1482_v56 = vmul.f32 0.17677669, %v1448_v55 }
 0x3e2   : > { %1644 = vmatpush.bf16.xpose.msrb.mxu2 %v1638_v12 }
 0x3e3   : > { %v1450_v1 = vpop.f32.mrf.mxu1 }
 0x3e4   : > { %v1483_v47 = vmul.f32 0.17677669, %v1450_v1 }
 0x3e6   : > { %v1496_v6 = vpack.c.bf16 %v1483_v47, %v1482_v56 }
 0x3ea   : > { %1645 = vmatpush.bf16.xpose.msrb.mxu2 %v1635_v14 }
 0x3eb   : > { %v1453_v7 = vpop.f32.mrf.mxu1 }
 0x3ec   : > { %v1484_v43 = vmul.f32 0.17677669, %v1453_v7 }
 0x3f2   : > { %1646 = vmatpush.bf16.xpose.msrb.mxu2 %v1632_v20 }
 0x3f3   : > { %v1455_v48 = vpop.f32.mrf.mxu1 }
 0x3f4   : > { %v1485_v61 = vmul.f32 0.17677669, %v1455_v48 }
 0x3f6   : > { %v1497_v63 = vpack.c.bf16 %v1485_v61, %v1484_v43 }
 0x3fa   : > { %1647 = vmatpush.bf16.xpose.msrb.mxu2 %v1629_v34 }
 0x3fb   : > { %v1458_v3 = vpop.f32.mrf.mxu1 }
 0x3fc   : > { %v1486_v4 = vmul.f32 0.17677669, %v1458_v3 }
 0x402   : > { %1648 = vmatpush.bf16.xpose.msrb.mxu2 %v1626_v24 }
 0x403   : > { %v1861_v45 = vpop.permute.xlu2 %1860  ;;  %v1460_v53 = vpop.f32.mrf.mxu1 }
 0x404   : > { %v1487_v54 = vmul.f32 0.17677669, %v1460_v53 }
 0x406   : > { %v1498_v5 = vpack.c.bf16 %v1487_v54, %v1486_v4 }
 0x40a   : > { %1649 = vmatpush.bf16.xpose.msrb.mxu2 %v1623_v22 }
 0x40b   : > { %v1463_v8 = vpop.f32.mrf.mxu1 }
 0x40c   : > { %v1488_v39 = vmul.f32 0.17677669, %v1463_v8 }
 0x412   : > { %1650 = vmatpush.bf16.xpose.msrb.mxu2 %v1620_v36 }
 0x413   : > { %v1863_v49 = vpop.permute.xlu2 %1862  ;;  %v1465_v9 = vpop.f32.mrf.mxu1 }
 0x414   : > { %v1489_v62 = vmul.f32 0.17677669, %v1465_v9 }
 0x416   : > { %v1499_v11 = vpack.c.bf16 %v1489_v62, %v1488_v39 }
 0x419   : > { %3039 = vmatmul.msk.bf16.vlgmr.msrb.gmra.mxu2 %vm830_vm2, %v1494_v40 }
 0x41b   : > { %v1468_v25 = vpop.f32.mrf.mxu1 }
 0x41c   : > { %v1490_v13 = vmul.f32 0.17677669, %v1468_v25 }
 0x423   : > { %v1470_v14 = vpop.f32.mrf.mxu1 }
 0x424   : > { %v1491_v20 = vmul.f32 0.17677669, %v1470_v14 }
 0x429   : > { %3040 = vmatmul.msk.bf16.gmra.mxu2 %vm830_vm2, %v1495_v0 }
 0x42b   : > { %v1473_v34 = vpop.f32.mrf.mxu1 }
 0x42c   : > { %v1492_v29 = vmul.f32 0.17677669, %v1473_v34  ;;  %v3165_v34 = vld [vmem:[%s4207_s14 + $0x8] sm:$0xff] }
 0x42d   : > { %1975 = vmatpush.bf16.msra.mxu1 %v3165_v34 }
 0x439   : > { %3041 = vmatmul.msk.bf16.gmra.mxu2 %vm830_vm2, %v1496_v6 }
 0x43b   : > { %v1865_v50 = vpop.permute.xlu1 %1864 }
 0x449   : > { %3042 = vmatmul.msk.bf16.gmra.mxu2 %vm830_vm2, %v1497_v63 }
 0x44b   : > { %v1867_v46 = vpop.permute.xlu1 %1866 }
 0x44c   : > { %1876 = vmatpush.bf16.msra.mxu0 %v1867_v46 }
 0x450   : > { %1877 = vmatpush.bf16.msra.mxu0 %v1865_v50 }
 0x454   : > { %1878 = vmatpush.bf16.msra.mxu0 %v1863_v49 }
 0x458   : > { %1879 = vmatpush.bf16.msra.mxu0 %v1861_v45 }
 0x459   : > { %3043 = vmatmul.msk.bf16.gmra.mxu2 %vm830_vm2, %v1498_v5 }
 0x469   : > { %3044 = vmatmul.msk.bf16.gmra.mxu2 %vm830_vm2, %v1499_v11 }
 0x49c   : > { %v1652_v15 = vpop.f32.mrf.mxu2 }
 0x49d   : > { %1692 = vmax.xlane.f32.xlu0 %v1652_v15 }
 0x4a4   : > { %v1654_v16 = vpop.f32.mrf.mxu2 }
 0x4a5   : > { %1694 = vmax.xlane.f32.xlu0 %v1654_v16 }
 0x4ac   : > { %v3802_v18 = vpop.f32.mrf.mxu2 }
 0x4b4   : > { %v1659_v12 = vpop.f32.mrf.mxu2 }
 0x4b9   : > { %1858 = vrot.lane.b32.xlu0 %v3774_v17, %s3328_s21  ;;  %v1500_v17 = vpack.c.bf16 %v1491_v20, %v1490_v13 }
 0x4bb   : > { %3045 = vmatmul.msk.bf16.gmra.mxu2 %vm830_vm2, %v1500_v17 }
 0x4bc   : > { %v3805_v23 = vpop.f32.mrf.mxu2 }
 0x4c1   : > { %1856 = vrot.lane.b32.xlu0 %v1589_v21, %s3328_s21 }
 0x4c9   : > { %1854 = vrot.lane.b32.xlu0 %v1588_v30, %s3328_s21  ;;  %v1475_v30 = vpop.f32.mrf.mxu1 }
 0x4ca   : > { %v1493_v22 = vmul.f32 0.17677669, %v1475_v30 }
 0x4cc   : > { %v1501_v31 = vpack.c.bf16 %v1493_v22, %v1492_v29 }
 0x4ce   : > { %3046 = vmatmul.msk.bf16.gmra.mxu2 %vm830_vm2, %v1501_v31 }
 0x4d1   : > { %1852 = vrot.lane.b32.xlu0 %v1587_v41, %s3328_s21  ;;  %v1664_v41 = vpop.f32.mrf.mxu2 }
 0x4d9   : > { %v1667_v40 = vpop.f32.mrf.mxu2 }
 0x4e1   : > { %v1669_v45 = vpop.f32.mrf.mxu2 }
 0x4e9   : > { %v3811_v32 = vpop.f32.mrf.mxu2 }
 0x4f1   : > { %v3814_v58 = vpop.f32.mrf.mxu2 }
 0x4f9   : > { %v3817_v42 = vpop.f32.mrf.mxu2 }
 0x4fb   : > { %1700 = vmax.xlane.f32.xlu0 %v3805_v23 }
 0x501   : > { %v3819_v47 = vpop.f32.mrf.mxu2 }
 0x510   : > { %v1693_v21 = vpop.xlane.xlu0 %1692 }
 0x511   : > { %v1724_v24 = vsub.f32 %v1652_v15, %v1693_v21 }
 0x513   : > { %v1740_v28 = vmul.f32 1.442695, %v1724_v24 }
 0x515   : > { %3192 = vpow2.f32 %v1740_v28 }
 0x518   : > { %v1695_v36 = vpop.xlane.xlu0 %1694 }
 0x519   : > { %v1725_v38 = vsub.f32 %v1654_v16, %v1695_v36 }
 0x51b   : > { %v3193_v27 = vpop.eup %3192  ;;  %v1742_v33 = vmul.f32 1.442695, %v1725_v38 }
 0x51c   : > { %1772 = vadd.xlane.f32.xlu1 %v3193_v27 }
 0x51d   : > { %3194 = vpow2.f32 %v1742_v33  ;;  %v3164_v33 = vld [vmem:[%s4207_s14] sm:$0xff] }
 0x51e   : > { %1976 = vmatpush.bf16.msra.mxu1 %v3164_v33 }
 0x523   : > { %v3195_v50 = vpop.eup %3194 }
 0x524   : > { %1774 = vadd.xlane.f32.xlu2 %v3195_v50  ;;  %1698 = vmax.xlane.f32.xlu1 %v1659_v12 }
 0x52b   : > { %v1859_v46 = vpop.permute.xlu0 %1858 }
 0x52c   : > { %1880 = vmatpush.bf16.msra.mxu0 %v1859_v46  ;;  %1696 = vmax.xlane.f32.xlu2 %v3802_v18 }
 0x52d   : > { %1704 = vmax.xlane.f32.xlu1 %v1667_v40 }
 0x533   : > { %v1857_v49 = vpop.permute.xlu0 %1856 }
 0x534   : > { %1881 = vmatpush.bf16.msra.mxu0 %v1857_v49  ;;  %1702 = vmax.xlane.f32.xlu2 %v1664_v41 }
 0x535   : > { %1708 = vmax.xlane.f32.xlu1 %v3811_v32 }
 0x53b   : > { %v1855_v57 = vpop.permute.xlu0 %1854 }
 0x53c   : > { %1882 = vmatpush.bf16.msra.mxu0 %v1855_v57  ;;  %1706 = vmax.xlane.f32.xlu2 %v1669_v45 }
 0x53e   : > { %v3824_v53 = vpop.f32.mrf.mxu2 }
 0x543   : > { %v1853_v52 = vpop.permute.xlu0 %1852 }
 0x544   : > { %1883 = vmatpush.bf16.msra.mxu0 %v1853_v52  ;;  %1710 = vmax.xlane.f32.xlu2 %v3814_v58 }
 0x56e   : > { %v1701_v54 = vpop.xlane.xlu0 %1700 }
 0x56f   : > { %v1728_v8 = vsub.f32 %v3805_v23, %v1701_v54 }
 0x571   : > { %v1748_v11 = vmul.f32 1.442695, %v1728_v8 }
 0x58f   : > { %v1773_v0 = vpop.xlane.xlu1 %1772 }
 0x590   : > { %3196 = vrcp.f32 %v1773_v0 }
 0x596   : > { %v3197_v6 = vpop.eup %3196 }
 0x597   : > { %v1775_v55 = vpop.xlane.xlu2 %1774  ;;  %v1699_v56 = vpop.xlane.xlu1 %1698  ;;  %v1820_v43 = vmul.f32 %v3197_v6, %v3193_v27 }
 0x598   : > { %3198 = vrcp.f32 %v1775_v55  ;;  %v1727_v1 = vsub.f32 %v1659_v12, %v1699_v56 }
 0x59a   : > { %v1746_v60 = vmul.f32 1.442695, %v1727_v1 }
 0x59c   : > { %3200 = vpow2.f32 %v1746_v60 }
 0x59e   : > { %v3199_v7 = vpop.eup %3198 }
 0x59f   : > { %v1821_v10 = vmul.f32 %v3199_v7, %v3195_v50  ;;  %v1697_v48 = vpop.xlane.xlu2 %1696 }
 0x5a0   : > { %v1726_v61 = vsub.f32 %v3802_v18, %v1697_v48  ;;  %v1705_v15 = vpop.xlane.xlu1 %1704  ;;  %v3829_v18 = vpop.f32.mrf.mxu2 }
 0x5a1   : > { %v1836_v63 = vpack.c.bf16 %v1821_v10, %v1820_v43  ;;  %v1730_v62 = vsub.f32 %v1667_v40, %v1705_v15 }
 0x5a2   : > { %v3822_v3 = vpop.eup %3200  ;;  %v1744_v4 = vmul.f32 1.442695, %v1726_v61 }
 0x5a3   : > { %1884 = vmatmul.bf16.vlgmr.msra.gmra.mxu0 %v1836_v63  ;;  %1778 = vadd.xlane.f32.xlu2 %v3822_v3  ;;  %v1752_v25 = vmul.f32 1.442695, %v1730_v62 }
 0x5a4   : > { %3202 = vpow2.f32 %v1744_v4 }
 0x5a7   : > { %v1703_v5 = vpop.xlane.xlu2 %1702 }
 0x5a8   : > { %v1729_v16 = vsub.f32 %v1664_v41, %v1703_v5  ;;  %v1709_v14 = vpop.xlane.xlu1 %1708  ;;  %v3840_v21 = vpop.f32.mrf.mxu2 }
 0x5a9   : > { %v1732_v23 = vsub.f32 %v3811_v32, %v1709_v14 }
 0x5aa   : > { %v3203_v39 = vpop.eup %3202  ;;  %v1750_v9 = vmul.f32 1.442695, %v1729_v16 }
 0x5ab   : > { %1776 = vadd.xlane.f32.xlu1 %v3203_v39  ;;  %1714 = vmax.xlane.f32.xlu2 %v3819_v47  ;;  %v1756_v29 = vmul.f32 1.442695, %v1732_v23 }
 0x5ac   : > { %3204 = vpow2.f32 %v1750_v9 }
 0x5ad   : > { %3206 = vpow2.f32 %v1748_v11 }
 0x5ae   : > { %3208 = vpow2.f32 %v1752_v25 }
 0x5af   : > { %v1707_v12 = vpop.xlane.xlu2 %1706 }
 0x5b0   : > { %v1731_v13 = vsub.f32 %v1669_v45, %v1707_v12  ;;  %v1689_v41 = vpop.f32.mrf.mxu2 }
 0x5b2   : > { %v3831_v20 = vpop.eup %3204  ;;  %v1754_v17 = vmul.f32 1.442695, %v1731_v13  ;;  %v3167_v13 = vld [vmem:[%s4208_s15 + $0x8] sm:$0xff] }
 0x5b3   : > { %1782 = vadd.xlane.f32.xlu0 %v3831_v20  ;;  %1712 = vmax.xlane.f32.xlu1 %v3817_v42  ;;  %v3842_v24 = vpop.eup %3206 }
 0x5b4   : > { %3210 = vpow2.f32 %v1754_v17  ;;  %1716 = vmax.xlane.f32.xlu2 %v3824_v53  ;;  %v3844_v30 = vpop.eup %3208  ;;  %2112 = vmatpush.bf16.msra.mxu2 %v3167_v13 }
 0x5b5   : > { %3212 = vpow2.f32 %v1756_v29  ;;  %3177 = vmatpush.bf16.msra.mxu3 %v3167_v13 }
 0x5b7   : > { %v1711_v22 = vpop.xlane.xlu2 %1710 }
 0x5b8   : > { %v1733_v36 = vsub.f32 %v3814_v58, %v1711_v22 }
 0x5ba   : > { %v3846_v28 = vpop.eup %3210  ;;  %v1758_v38 = vmul.f32 1.442695, %v1733_v36 }
 0x5bb   : > { %1784 = vadd.xlane.f32.xlu0 %v3844_v30  ;;  %1780 = vadd.xlane.f32.xlu1 %v3842_v24  ;;  %v3851_v31 = vpop.eup %3212 }
 0x5bc   : > { %1786 = vadd.xlane.f32.xlu2 %v3846_v28  ;;  %3214 = vpow2.f32 %v1758_v38 }
 0x5c2   : > { %v3857_v27 = vpop.eup %3214 }
 0x5c3   : > { %1718 = vmax.xlane.f32.xlu1 %v3829_v18  ;;  %1722 = vmax.xlane.f32.xlu0 %v1689_v41 }
 0x5c4   : > { %1788 = vadd.xlane.f32.xlu2 %v3851_v31 }
 0x5cb   : > { %1720 = vmax.xlane.f32.xlu1 %v3840_v21 }
 0x5d3   : > { %1790 = vadd.xlane.f32.xlu1 %v3857_v27 }
 0x616   : > { %v1779_v40 = vpop.xlane.xlu2 %1778 }
 0x617   : > { %3216 = vrcp.f32 %v1779_v40 }
 0x61d   : > { %v3217_v57 = vpop.eup %3216 }
 0x61e   : > { %v1777_v50 = vpop.xlane.xlu1 %1776  ;;  %v1715_v45 = vpop.xlane.xlu2 %1714  ;;  %v1823_v56 = vmul.f32 %v3217_v57, %v3822_v3 }
 0x61f   : > { %3218 = vrcp.f32 %v1777_v50  ;;  %v1735_v46 = vsub.f32 %v3819_v47, %v1715_v45 }
 0x620   : > { %v1885_v32 = vpop.f32.mrf.mxu0 }
 0x621   : > { %v1762_v49 = vmul.f32 1.442695, %v1735_v46 }
 0x623   : > { %3220 = vpow2.f32 %v1762_v49 }
 0x625   : > { %v3219_v58 = vpop.eup %3218 }
 0x626   : > { %v1783_v52 = vpop.xlane.xlu0 %1782  ;;  %v1713_v0 = vpop.xlane.xlu1 %1712  ;;  %v1822_v55 = vmul.f32 %v3219_v58, %v3203_v39 }
 0x627   : > { %v1734_v1 = vsub.f32 %v3817_v42, %v1713_v0  ;;  %v1717_v60 = vpop.xlane.xlu2 %1716 }
 0x628   : > { %v1736_v6 = vsub.f32 %v3824_v53, %v1717_v60  ;;  %v1887_v7 = vpop.f32.mrf.mxu0  ;;  %v1837_v43 = vpack.c.bf16 %v1823_v56, %v1822_v55 }
 0x629   : > { %v3867_v10 = vpop.eup %3220  ;;  %v1760_v47 = vmul.f32 1.442695, %v1734_v1  ;;  %v1925_v48 = vpack.c.bf16 %v1887_v7, %v1885_v32 }
 0x62a   : > { %v1764_v61 = vmul.f32 1.442695, %v1736_v6  ;;  %1889 = vmatmul.bf16.gmra.mxu0 %v1837_v43  ;;  %1794 = vadd.xlane.f32.xlu2 %v3867_v10 }
 0x62b   : > { %3222 = vpow2.f32 %v1760_v47  ;;  %3055 = vmatmul.msk.bf16.vlgmr.msra.gmra.mxu1 %vm830_vm2, %v1925_v48 }
 0x62c   : > { %3224 = vpow2.f32 %v1764_v61 }
 0x62d   : > { %3226 = vrcp.f32 %v1783_v52  ;;  %v665_v52 = vld [vmem:[%s3759_s0] sm:$0xff]  }
 0x62e   : > { %v1785_v63 = vpop.xlane.xlu0 %1784  ;;  %v1781_v42 = vpop.xlane.xlu1 %1780  ;;  %v2018_v55 = vunpack.c.l.bf16 %v665_v52  ;;  %v2019_v56 = vunpack.c.h.bf16 %v665_v52 }
 0x62f   : > { %3228 = vrcp.f32 %v1781_v42  ;;  %v1787_v16 = vpop.xlane.xlu2 %1786 }
 0x630   : > { %3230 = vrcp.f32 %v1785_v63 }
 0x631   : > { %v3871_v3 = vpop.eup %3222  ;;  %3232 = vrcp.f32 %v1787_v16 }
 0x632   : > { %v3873_v4 = vpop.eup %3224  ;;  %1792 = vadd.xlane.f32.xlu0 %v3871_v3 }
 0x633   : > { %1796 = vadd.xlane.f32.xlu1 %v3873_v4  ;;  %v3227_v53 = vpop.eup %3226 }
 0x634   : > { %v1825_v62 = vmul.f32 %v3227_v53, %v3831_v20 }
 0x635   : > { %v3229_v54 = vpop.eup %3228 }
 0x636   : > { %v1719_v15 = vpop.xlane.xlu1 %1718  ;;  %v1723_v5 = vpop.xlane.xlu0 %1722  ;;  %v1824_v9 = vmul.f32 %v3229_v54, %v3842_v24 }
 0x637   : > { %v1737_v8 = vsub.f32 %v3829_v18, %v1719_v15  ;;  %v1739_v39 = vsub.f32 %v1689_v41, %v1723_v5  ;;  %v3231_v14 = vpop.eup %3230 }
 0x638   : > { %v1838_v12 = vpack.c.bf16 %v1825_v62, %v1824_v9  ;;  %v3233_v23 = vpop.eup %3232  ;;  %v1826_v29 = vmul.f32 %v3231_v14, %v3844_v30  ;;  %v3166_v30 = vld [vmem:[%s4208_s15] sm:$0xff] }
 0x639   : > { %v1766_v11 = vmul.f32 1.442695, %v1737_v8  ;;  %v1770_v25 = vmul.f32 1.442695, %v1739_v39  ;;  %v1827_v22 = vmul.f32 %v3233_v23, %v3846_v28  ;;  %2113 = vmatpush.bf16.msra.mxu2 %v3166_v30  ;;  %3178 = vmatpush.bf16.msra.mxu3 %v3166_v30  ;;  %v3169_v28 = vld [vmem:[%s4209_s16 + $0x8] sm:$0xff] }
 0x63a   : > { %1894 = vmatmul.bf16.gmra.mxu0 %v1838_v12 }
 0x63b   : > { %3234 = vpow2.f32 %v1766_v11  ;;  %v1839_v38 = vpack.c.bf16 %v1827_v22, %v1826_v29 }
 0x63c   : > { %3236 = vpow2.f32 %v1770_v25 }
 0x63d   : > { %2197 = vmatpush.bf16.msrb.mxu2 %v3169_v28 }
 0x63e   : > { %v1721_v18 = vpop.xlane.xlu1 %1720 }
 0x63f   : > { %v1738_v17 = vsub.f32 %v3840_v21, %v1721_v18  ;;  %v1789_v21 = vpop.xlane.xlu2 %1788 }
 0x641   : > { %v3235_v20 = vpop.eup %3234  ;;  %v1768_v34 = vmul.f32 1.442695, %v1738_v17 }
 0x642   : > { %v3884_v24 = vpop.eup %3236  ;;  %1798 = vadd.xlane.f32.xlu0 %v3235_v20 }
 0x643   : > { %3238 = vpow2.f32 %v1768_v34  ;;  %1802 = vadd.xlane.f32.xlu1 %v3884_v24 }
 0x646   : > { %v1791_v36 = vpop.xlane.xlu1 %1790 }
 0x647   : > { %3240 = vrcp.f32 %v1791_v36 }
 0x648   : > { %3242 = vrcp.f32 %v1789_v21 }
 0x649   : > { %v3889_v41 = vpop.eup %3238 }
 0x64a   : > { %1800 = vadd.xlane.f32.xlu2 %v3889_v41  ;;  %1899 = vmatmul.bf16.gmra.mxu0 %v1839_v38 }
 0x64d   : > { %v3241_v33 = vpop.eup %3240 }
 0x64e   : > { %v3243_v40 = vpop.eup %3242  ;;  %v1829_v50 = vmul.f32 %v3241_v33, %v3857_v27  ;;  %v3168_v27 = vld [vmem:[%s4209_s16] sm:$0xff] }
 0x64f   : > { %v1828_v45 = vmul.f32 %v3243_v40, %v3851_v31  ;;  %2198 = vmatpush.bf16.msrb.mxu2 %v3168_v27 }
 0x651   : > { %v1840_v46 = vpack.c.bf16 %v1829_v50, %v1828_v45  ;;  %v669_v50 = vld [vmem:[%s3759_s0 + $0x10] sm:$0xff]  }
 0x652   : > { %v2023_v30 = vunpack.c.h.bf16 %v669_v50 }
 0x65a   : > { %1904 = vmatmul.bf16.gmra.mxu0 %v1840_v46  ;;  %v2022_v46 = vunpack.c.l.bf16 %v669_v50 }
 0x69d   : > { %v1795_v32 = vpop.xlane.xlu2 %1794 }
 0x69e   : > { %3244 = vrcp.f32 %v1795_v32 }
 0x6a4   : > { %v3245_v58 = vpop.eup %3244 }
 0x6a5   : > { %v1793_v31 = vpop.xlane.xlu0 %1792  ;;  %v1831_v60 = vmul.f32 %v3245_v58, %v3867_v10 }
 0x6a6   : > { %3246 = vrcp.f32 %v1793_v31  ;;  %v1797_v48 = vpop.xlane.xlu1 %1796 }
 0x6a7   : > { %v1890_v49 = vpop.f32.mrf.mxu0  ;;  %3248 = vrcp.f32 %v1797_v48 }
 0x6a8   : > { %v3903_v57 = vpop.f32.mrf.mxu1 }
 0x6a9   : > { %v2034_v61 = vadd.f32 %v2018_v55, %v3903_v57 }
 0x6ac   : > { %v3247_v0 = vpop.eup %3246 }
 0x6ad   : > { %v1830_v1 = vmul.f32 %v3247_v0, %v3871_v3  ;;  %v3249_v53 = vpop.eup %3248 }
 0x6ae   : > { %v1832_v15 = vmul.f32 %v3249_v53, %v3873_v4 }
 0x6af   : > { %v1892_v6 = vpop.f32.mrf.mxu0  ;;  %v1841_v7 = vpack.c.bf16 %v1831_v60, %v1830_v1  ;;  %v671_v60 = vld [vmem:[%s3759_s0 + $0x18] sm:$0xff]  }
 0x6b0   : > { %v1926_v43 = vpack.c.bf16 %v1892_v6, %v1890_v49  ;;  %v3908_v47 = vpop.f32.mrf.mxu1  ;;  %v2024_v6 = vunpack.c.l.bf16 %v671_v60 }
 0x6b1   : > { %v2035_v63 = vadd.f32 %v2019_v56, %v3908_v47  ;;  %1909 = vmatmul.bf16.gmra.mxu0 %v1841_v7  ;;  %v2025_v7 = vunpack.c.h.bf16 %v671_v60 }
 0x6b2   : > { %3056 = vmatmul.msk.bf16.gmra.mxu1 %vm830_vm2, %v1926_v43 }
 0x6b3   : > { %v2050_v42 = vpack.c.bf16 %v2035_v63, %v2034_v61 }
 0x6b5   : > { %3071 = vmatmul.msk.bf16.vlgmr.msra.gmra.mxu2 %vm830_vm2, %v2050_v42  ;;  %v1799_v3 = vpop.xlane.xlu0 %1798 }
 0x6b6   : > { %3250 = vrcp.f32 %v1799_v3  ;;  %v1803_v9 = vpop.xlane.xlu1 %1802 }
 0x6b7   : > { %v1895_v10 = vpop.f32.mrf.mxu0 }
 0x6bc   : > { %v3251_v54 = vpop.eup %3250 }
 0x6bd   : > { %v1833_v5 = vmul.f32 %v3251_v54, %v3235_v20  ;;  %v1801_v16 = vpop.xlane.xlu2 %1800 }
 0x6be   : > { %3252 = vrcp.f32 %v1801_v16 }
 0x6bf   : > { %v1842_v8 = vpack.c.bf16 %v1833_v5, %v1832_v15  ;;  %v1897_v39 = vpop.f32.mrf.mxu0  ;;  %3254 = vrcp.f32 %v1803_v9  ;;  %v673_v5 = vld [vmem:[%s3759_s0 + $0x20] sm:$0xff]  }
 0x6c0   : > { %v1927_v62 = vpack.c.bf16 %v1897_v39, %v1895_v10  ;;  %v2026_v16 = vunpack.c.l.bf16 %v673_v5 }
 0x6c1   : > { %1914 = vmatmul.bf16.gmra.mxu0 %v1842_v8  ;;  %v2027_v8 = vunpack.c.h.bf16 %v673_v5 }
 0x6c2   : > { %3057 = vmatmul.msk.bf16.gmra.mxu1 %vm830_vm2, %v1927_v62 }
 0x6c4   : > { %v3253_v11 = vpop.eup %3252 }
 0x6c5   : > { %3087 = vmatmul.msk.bf16.vlgmr.msrb.gmra.mxu2 %vm830_vm2, %v3572_v19  ;;  %v3255_v12 = vpop.eup %3254  ;;  %v1834_v13 = vmul.f32 %v3253_v11, %v3889_v41 }
 0x6c6   : > { %v1835_v4 = vmul.f32 %v3255_v12, %v3884_v24  ;;  %v667_v24 = vld [vmem:[%s3759_s0 + $0x8] sm:$0xff]  }
 0x6c7   : > { %v1900_v25 = vpop.f32.mrf.mxu0  ;;  %v2020_v29 = vunpack.c.l.bf16 %v667_v24  ;;  %v2021_v22 = vunpack.c.h.bf16 %v667_v24 }
 0x6c8   : > { %v1843_v18 = vpack.c.bf16 %v1835_v4, %v1834_v13 }
 0x6cf   : > { %v1902_v14 = vpop.f32.mrf.mxu0 }
 0x6d0   : > { %v1928_v17 = vpack.c.bf16 %v1902_v14, %v1900_v25 }
 0x6d1   : > { %1919 = vmatmul.bf16.gmra.mxu0 %v1843_v18 }
 0x6d2   : > { %3058 = vmatmul.msk.bf16.gmra.mxu1 %vm830_vm2, %v1928_v17 }
 0x6d5   : > { %3088 = vmatmul.msk.bf16.gmra.mxu2 %vm830_vm2, %v3586_v26 }
 0x6d7   : > { %v1905_v23 = vpop.f32.mrf.mxu0 }
 0x6df   : > { %v1907_v20 = vpop.f32.mrf.mxu0 }
 0x6e0   : > { %v1929_v19 = vpack.c.bf16 %v1907_v20, %v1905_v23 }
 0x6e2   : > { %3059 = vmatmul.msk.bf16.gmra.mxu1 %vm830_vm2, %v1929_v19 }
 0x6e5   : > { %3089 = vmatmul.msk.bf16.gmra.mxu2 %vm830_vm2, %v3600_v35 }
 0x6f5   : > { %3090 = vmatmul.msk.bf16.gmra.mxu2 %vm830_vm2, %v3614_v44 }
 0x705   : > { %3091 = vmatmul.msk.bf16.gmra.mxu2 %vm830_vm2, %v3628_v51 }
 0x715   : > { %3092 = vmatmul.msk.bf16.gmra.mxu2 %vm830_vm2, %v3645_v59 }
 0x725   : > { %3093 = vmatmul.msk.bf16.gmra.mxu2 %vm830_vm2, %v3662_v2 }
 0x72e   : > { %v1910_v26 = vpop.f32.mrf.mxu0 }
 0x72f   : > { %v3934_v34 = vpop.f32.mrf.mxu1 }
 0x730   : > { %v2036_v51 = vadd.f32 %v2020_v29, %v3934_v34 }
 0x735   : > { %3094 = vmatmul.msk.bf16.gmra.mxu2 %vm830_vm2, %v3682_v37 }
 0x736   : > { %v1912_v35 = vpop.f32.mrf.mxu0 }
 0x737   : > { %v1930_v44 = vpack.c.bf16 %v1912_v35, %v1910_v26  ;;  %v3939_v41 = vpop.f32.mrf.mxu1 }
 0x738   : > { %v2037_v59 = vadd.f32 %v2021_v22, %v3939_v41  ;;  %v2115_v36 = vpop.f32.mrf.mxu2 }
 0x739   : > { %3060 = vmatmul.msk.bf16.gmra.mxu1 %vm830_vm2, %v1930_v44  ;;  %v3947_v40 = vmul.f32 0.17677669, %v2115_v36 }
 0x73a   : > { %v2051_v2 = vpack.c.bf16 %v2037_v59, %v2036_v51  ;;  %v675_v51 = vld [vmem:[%s3759_s0 + $0x28] sm:$0xff]  }
 0x73b   : > { %v2028_v36 = vunpack.c.l.bf16 %v675_v51 }
 0x73c   : > { %3072 = vmatmul.msk.bf16.vlgmr.msra.gmra.mxu3 %vm830_vm2, %v2051_v2  ;;  %v2029_v2 = vunpack.c.h.bf16 %v675_v51 }
 0x73e   : > { %v1915_v38 = vpop.f32.mrf.mxu0 }
 0x73f   : > { %v3945_v21 = vpop.f32.mrf.mxu1 }
 0x740   : > { %v2117_v33 = vpop.f32.mrf.mxu2  ;;  %v2038_v49 = vadd.f32 %v2022_v46, %v3945_v21 }
 0x741   : > { %v3949_v37 = vmul.f32 0.17677669, %v2117_v33 }
 0x743   : > { %v2171_v45 = vpack.c.bf16 %v3949_v37, %v3947_v40 }
 0x746   : > { %v1917_v28 = vpop.f32.mrf.mxu0 }
 0x747   : > { %v1931_v32 = vpack.c.bf16 %v1917_v28, %v1915_v38  ;;  %v3954_v27 = vpop.f32.mrf.mxu1 }
 0x748   : > { %v2200_v31 = vpop.f32.mrf.mxu2  ;;  %v2039_v58 = vadd.f32 %v2023_v30, %v3954_v27 }
 0x749   : > { %3061 = vmatmul.msk.bf16.gmra.mxu1 %vm830_vm2, %v1931_v32 }
 0x74a   : > { %v2052_v52 = vpack.c.bf16 %v2039_v58, %v2038_v49  ;;  %v677_v49 = vld [vmem:[%s3759_s0 + $0x30] sm:$0xff]  }
 0x74b   : > { %v2030_v58 = vunpack.c.l.bf16 %v677_v49 }
 0x74c   : > { %3073 = vmatmul.msk.bf16.gmra.mxu3 %vm830_vm2, %v2052_v52 }
 0x74e   : > { %v1920_v0 = vpop.f32.mrf.mxu0 }
 0x74f   : > { %v3960_v55 = vpop.f32.mrf.mxu1 }
 0x750   : > { %v2202_v56 = vpop.f32.mrf.mxu2  ;;  %v2040_v42 = vadd.f32 %v2024_v6, %v3960_v55 }
 0x751   : > { %v3962_v1 = vpack.c.bf16 %v2202_v56, %v2200_v31 }
 0x756   : > { %v1922_v43 = vpop.f32.mrf.mxu0 }
 0x757   : > { %v1932_v48 = vpack.c.bf16 %v1922_v43, %v1920_v0  ;;  %v3965_v61 = vpop.f32.mrf.mxu1  ;;  %v2031_v0 = vunpack.c.h.bf16 %v677_v49 }
 0x758   : > { %v2205_v63 = vpop.f32.mrf.mxu2  ;;  %v2041_v3 = vadd.f32 %v2025_v7, %v3965_v61 }
 0x759   : > { %3062 = vmatmul.msk.bf16.gmra.mxu1 %vm830_vm2, %v1932_v48 }
 0x75a   : > { %v2053_v10 = vpack.c.bf16 %v2041_v3, %v2040_v42 }
 0x75c   : > { %3074 = vmatmul.msk.bf16.gmra.mxu3 %vm830_vm2, %v2053_v10 }
 0x75f   : > { %v3971_v53 = vpop.f32.mrf.mxu1 }
 0x760   : > { %v2207_v54 = vpop.f32.mrf.mxu2  ;;  %v2042_v62 = vadd.f32 %v2026_v16, %v3971_v53 }
 0x761   : > { %v3973_v15 = vpack.c.bf16 %v2207_v54, %v2205_v63  ;;  %v679_v63 = vld [vmem:[%s3759_s0 + $0x38] sm:$0xff]  }
 0x762   : > { %v2032_v42 = vunpack.c.l.bf16 %v679_v63  ;;  %v2033_v10 = vunpack.c.h.bf16 %v679_v63 }
 0x767   : > { %v3976_v39 = vpop.f32.mrf.mxu1 }
 0x768   : > { %v2210_v9 = vpop.f32.mrf.mxu2  ;;  %v2043_v11 = vadd.f32 %v2027_v8, %v3976_v39 }
 0x76a   : > { %v2054_v25 = vpack.c.bf16 %v2043_v11, %v2042_v62  ;;  %v2276_v11 = vsel %vm830_vm2, %v3973_v15, 0 }
 0x76c   : > { %3075 = vmatmul.msk.bf16.gmra.mxu3 %vm830_vm2, %v2054_v25 }
 0x770   : > { %v2212_v12 = vpop.f32.mrf.mxu2 }
 0x771   : > { %v3981_v13 = vpack.c.bf16 %v2212_v12, %v2210_v9  ;;  %v2273_v12 = vsel %vm830_vm2, %v3962_v1, 0 }
 0x773   : > { %v2279_v62 = vsel %vm830_vm2, %v3981_v13, 0 }
 0x778   : > { %v2215_v4 = vpop.f32.mrf.mxu2 }
 0x780   : > { %v2217_v18 = vpop.f32.mrf.mxu2 }
 0x781   : > { %v2243_v14 = vpack.c.bf16 %v2217_v18, %v2215_v4 }
 0x783   : > { %2511 = vrot.lane.b32.xlu1 %v2243_v14, %s3328_s21  ;;  %v2282_v9 = vsel %vm830_vm2, %v2243_v14, 0 }
 0x788   : > { %v2220_v17 = vpop.f32.mrf.mxu2 }
 0x790   : > { %v2222_v23 = vpop.f32.mrf.mxu2 }
 0x791   : > { %v2244_v20 = vpack.c.bf16 %v2222_v23, %v2220_v17 }
 0x793   : > { %2513 = vrot.lane.b32.xlu0 %v2244_v20, %s3328_s21  ;;  %v2285_v3 = vsel %vm830_vm2, %v2244_v20, 0 }
 0x798   : > { %v2225_v19 = vpop.f32.mrf.mxu2 }
 0x7a0   : > { %v2227_v26 = vpop.f32.mrf.mxu2 }
 0x7a1   : > { %v2245_v24 = vpack.c.bf16 %v2227_v26, %v2225_v19 }
 0x7a3   : > { %2515 = vrot.lane.b32.xlu1 %v2245_v24, %s3328_s21  ;;  %v2288_v43 = vsel %vm830_vm2, %v2245_v24, 0 }
 0x7a8   : > { %v2230_v29 = vpop.f32.mrf.mxu2 }
 0x7b0   : > { %v2232_v22 = vpop.f32.mrf.mxu2 }
 0x7b1   : > { %v2246_v35 = vpack.c.bf16 %v2232_v22, %v2230_v29 }
 0x7b3   : > { %2517 = vrot.lane.b32.xlu2 %v2246_v35, %s3328_s21  ;;  %v2291_v52 = vsel %vm830_vm2, %v2246_v35, 0 }
 0x7b6   : > { %v3987_v44 = vpop.f32.mrf.mxu1 }
 0x7b7   : > { %v2044_v33 = vadd.f32 %v2028_v36, %v3987_v44 }
 0x7b8   : > { %v2235_v59 = vpop.f32.mrf.mxu2 }
 0x7be   : > { %v3990_v38 = vpop.f32.mrf.mxu1 }
 0x7bf   : > { %v2045_v50 = vadd.f32 %v2029_v2, %v3990_v38  ;;  %v2120_v25 = vpop.f32.mrf.mxu3 }
 0x7c0   : > { %v2237_v46 = vpop.f32.mrf.mxu2  ;;  %v2157_v17 = vmul.f32 0.17677669, %v2120_v25 }
 0x7c1   : > { %v2055_v30 = vpack.c.bf16 %v2045_v50, %v2044_v33  ;;  %v2247_v28 = vpack.c.bf16 %v2237_v46, %v2235_v59 }
 0x7c3   : > { %v2294_v32 = vsel %vm830_vm2, %v2247_v28, 0  ;;  %3076 = vmatmul.msk.bf16.gmra.mxu3 %vm830_vm2, %v2055_v30  ;;  %2519 = vrot.lane.b32.xlu0 %v2247_v28, %s3328_s21 }
 0x7c4   : > { %2296 = vmatpush.bf16.xpose.msrb.mxu0 %v2294_v32 }
 0x7c6   : > { %v3997_v31 = vpop.f32.mrf.mxu1 }
 0x7c7   : > { %v2046_v60 = vadd.f32 %v2030_v58, %v3997_v31  ;;  %v2122_v4 = vpop.f32.mrf.mxu3 }
 0x7c8   : > { %v2158_v14 = vmul.f32 0.17677669, %v2122_v4 }
 0x7ca   : > { %v2172_v23 = vpack.c.bf16 %v2158_v14, %v2157_v17 }
 0x7cc   : > { %2297 = vmatpush.bf16.xpose.msrb.mxu0 %v2291_v52 }
 0x7ce   : > { %v4001_v56 = vpop.f32.mrf.mxu1 }
 0x7cf   : > { %v2047_v6 = vadd.f32 %v2031_v0, %v4001_v56  ;;  %v2125_v18 = vpop.f32.mrf.mxu3 }
 0x7d0   : > { %v2159_v24 = vmul.f32 0.17677669, %v2125_v18 }
 0x7d1   : > { %v2056_v7 = vpack.c.bf16 %v2047_v6, %v2046_v60 }
 0x7d3   : > { %3077 = vmatmul.msk.bf16.gmra.mxu3 %vm830_vm2, %v2056_v7 }
 0x7d4   : > { %2298 = vmatpush.bf16.xpose.msrb.mxu0 %v2288_v43 }
 0x7d6   : > { %v4007_v48 = vpop.f32.mrf.mxu1 }
 0x7d7   : > { %v2048_v5 = vadd.f32 %v2032_v42, %v4007_v48  ;;  %v2127_v20 = vpop.f32.mrf.mxu3 }
 0x7d8   : > { %v2160_v26 = vmul.f32 0.17677669, %v2127_v20 }
 0x7da   : > { %v2173_v29 = vpack.c.bf16 %v2160_v26, %v2159_v24 }
 0x7dc   : > { %2299 = vmatpush.bf16.xpose.msrb.mxu0 %v2285_v3 }
 0x7de   : > { %v4011_v54 = vpop.f32.mrf.mxu1 }
 0x7df   : > { %v2049_v16 = vadd.f32 %v2033_v10, %v4011_v54  ;;  %v2130_v19 = vpop.f32.mrf.mxu3 }
 0x7e0   : > { %v2161_v59 = vmul.f32 0.17677669, %v2130_v19 }
 0x7e1   : > { %v2057_v8 = vpack.c.bf16 %v2049_v16, %v2048_v5 }
 0x7e3   : > { %3078 = vmatmul.msk.bf16.gmra.mxu3 %vm830_vm2, %v2057_v8 }
 0x7e4   : > { %2300 = vmatpush.bf16.xpose.msrb.mxu0 %v2282_v9 }
 0x7e7   : > { %v2132_v22 = vpop.f32.mrf.mxu3 }
 0x7e8   : > { %v2162_v35 = vmul.f32 0.17677669, %v2132_v22 }
 0x7ea   : > { %v2174_v37 = vpack.c.bf16 %v2162_v35, %v2161_v59 }
 0x7ec   : > { %2301 = vmatpush.bf16.xpose.msrb.mxu0 %v2279_v62 }
 0x7ef   : > { %v2135_v40 = vpop.f32.mrf.mxu3 }
 0x7f0   : > { %v2163_v30 = vmul.f32 0.17677669, %v2135_v40 }
 0x7f4   : > { %2302 = vmatpush.bf16.xpose.msrb.mxu0 %v2276_v11 }
 0x7f7   : > { %v2137_v33 = vpop.f32.mrf.mxu3 }
 0x7f8   : > { %v2164_v50 = vmul.f32 0.17677669, %v2137_v33 }
 0x7fa   : > { %v2175_v28 = vpack.c.bf16 %v2164_v50, %v2163_v30 }
 0x7fc   : > { %2303 = vmatpush.bf16.xpose.msrb.mxu0 %v2273_v12 }
 0x803   : > { %3095 = vmatmul.msk.bf16.vlgmr.msrb.gmra.mxu0 %vm830_vm2, %v2171_v45  ;;  %v2512_v45 = vpop.permute.xlu1 %2511 }
 0x805   : > { %v2514_v51 = vpop.permute.xlu0 %2513 }
 0x80d   : > { %v2518_v2 = vpop.permute.xlu2 %2517 }
 0x813   : > { %3096 = vmatmul.msk.bf16.gmra.mxu0 %vm830_vm2, %v2172_v23 }
 0x815   : > { %v2516_v46 = vpop.permute.xlu1 %2515 }
 0x823   : > { %3097 = vmatmul.msk.bf16.gmra.mxu0 %vm830_vm2, %v2173_v29 }
 0x833   : > { %3098 = vmatmul.msk.bf16.gmra.mxu0 %vm830_vm2, %v2174_v37 }
 0x835   : > { %v2520_v36 = vpop.permute.xlu0 %2519 }
 0x836   : > { %2529 = vmatpush.bf16.msrb.mxu1 %v2520_v36 }
 0x83a   : > { %2530 = vmatpush.bf16.msrb.mxu1 %v2518_v2 }
 0x83e   : > { %2531 = vmatpush.bf16.msrb.mxu1 %v2516_v46 }
 0x842   : > { %2532 = vmatpush.bf16.msrb.mxu1 %v2514_v51 }
 0x843   : > { %3099 = vmatmul.msk.bf16.gmra.mxu0 %vm830_vm2, %v2175_v28 }
 0x846   : > { %v2140_v32 = vpop.f32.mrf.mxu3  ;;  %2533 = vmatpush.bf16.msrb.mxu1 %v2512_v45 }
 0x847   : > { %v2165_v58 = vmul.f32 0.17677669, %v2140_v32 }
 0x84e   : > { %v2142_v49 = vpop.f32.mrf.mxu3 }
 0x84f   : > { %v2166_v52 = vmul.f32 0.17677669, %v2142_v49 }
 0x851   : > { %v2176_v0 = vpack.c.bf16 %v2166_v52, %v2165_v58 }
 0x853   : > { %3100 = vmatmul.msk.bf16.gmra.mxu0 %vm830_vm2, %v2176_v0 }
 0x856   : > { %v2145_v60 = vpop.f32.mrf.mxu3 }
 0x857   : > { %v2167_v7 = vmul.f32 0.17677669, %v2145_v60 }
 0x85e   : > { %v2147_v6 = vpop.f32.mrf.mxu3 }
 0x85f   : > { %v2168_v43 = vmul.f32 0.17677669, %v2147_v6 }
 0x861   : > { %v2177_v63 = vpack.c.bf16 %v2168_v43, %v2167_v7 }
 0x863   : > { %3101 = vmatmul.msk.bf16.gmra.mxu0 %vm830_vm2, %v2177_v63 }
 0x866   : > { %v2150_v42 = vpop.f32.mrf.mxu3 }
 0x867   : > { %v2169_v10 = vmul.f32 0.17677669, %v2150_v42 }
 0x86e   : > { %v2152_v3 = vpop.f32.mrf.mxu3 }
 0x86f   : > { %v2170_v5 = vmul.f32 0.17677669, %v2152_v3 }
 0x871   : > { %v2178_v16 = vpack.c.bf16 %v2170_v5, %v2169_v10 }
 0x873   : > { %3102 = vmatmul.msk.bf16.gmra.mxu0 %vm830_vm2, %v2178_v16 }
 0x880   : > { %v2305_v8 = vpop.f32.mrf.mxu0 }
 0x881   : > { %2345 = vmax.xlane.f32.xlu0 %v2305_v8 }
 0x888   : > { %v2307_v9 = vpop.f32.mrf.mxu0 }
 0x889   : > { %2347 = vmax.xlane.f32.xlu2 %v2307_v9 }
 0x890   : > { %v2310_v62 = vpop.f32.mrf.mxu0 }
 0x891   : > { %2349 = vmax.xlane.f32.xlu1 %v2310_v62 }
 0x898   : > { %v2312_v11 = vpop.f32.mrf.mxu0 }
 0x899   : > { %2351 = vmax.xlane.f32.xlu0 %v2312_v11 }
 0x8a0   : > { %v2315_v25 = vpop.f32.mrf.mxu0 }
 0x8a1   : > { %2353 = vmax.xlane.f32.xlu2 %v2315_v25 }
 0x8a8   : > { %v2317_v12 = vpop.f32.mrf.mxu0 }
 0x8a9   : > { %2355 = vmax.xlane.f32.xlu1 %v2317_v12 }
 0x8b0   : > { %v2320_v4 = vpop.f32.mrf.mxu0 }
 0x8b1   : > { %2357 = vmax.xlane.f32.xlu2 %v2320_v4 }
 0x8b8   : > { %v4034_v18 = vpop.f32.mrf.mxu0 }
 0x8b9   : > { %2359 = vmax.xlane.f32.xlu0 %v4034_v18 }
 0x8c0   : > { %v4039_v14 = vpop.f32.mrf.mxu0 }
 0x8c8   : > { %v4042_v19 = vpop.f32.mrf.mxu0 }
 0x8cd   : > { %2509 = vrot.lane.b32.xlu0 %v3981_v13, %s3328_s21 }
 0x8d0   : > { %v4047_v35 = vpop.f32.mrf.mxu0 }
 0x8d8   : > { %v4052_v40 = vpop.f32.mrf.mxu0 }
 0x8e0   : > { %v4057_v2 = vpop.f32.mrf.mxu0 }
 0x8e8   : > { %v4064_v28 = vpop.f32.mrf.mxu0 }
 0x8f4   : > { %v2346_v17 = vpop.xlane.xlu0 %2345 }
 0x8f5   : > { %v2377_v23 = vsub.f32 %v2305_v8, %v2346_v17 }
 0x8f7   : > { %v2393_v20 = vmul.f32 1.442695, %v2377_v23  ;;  %2361 = vmax.xlane.f32.xlu0 %v4039_v14 }
 0x8f9   : > { %3256 = vpow2.f32 %v2393_v20 }
 0x8fc   : > { %v2348_v26 = vpop.xlane.xlu2 %2347 }
 0x8fd   : > { %v2378_v24 = vsub.f32 %v2307_v9, %v2348_v26 }
 0x8ff   : > { %v4044_v29 = vpop.eup %3256  ;;  %v2395_v22 = vmul.f32 1.442695, %v2378_v24 }
 0x900   : > { %2425 = vadd.xlane.f32.xlu1 %v4044_v29 }
 0x901   : > { %3258 = vpow2.f32 %v2395_v22 }
 0x904   : > { %v2350_v45 = vpop.xlane.xlu1 %2349 }
 0x907   : > { %v4049_v13 = vpop.eup %3258 }
 0x908   : > { %2427 = vadd.xlane.f32.xlu2 %v4049_v13 }
 0x90c   : > { %v2352_v51 = vpop.xlane.xlu0 %2351 }
 0x90d   : > { %v2380_v59 = vsub.f32 %v2312_v11, %v2352_v51 }
 0x90f   : > { %v2399_v37 = vmul.f32 1.442695, %v2380_v59 }
 0x911   : > { %3260 = vpow2.f32 %v2399_v37 }
 0x914   : > { %v2354_v33 = vpop.xlane.xlu2 %2353 }
 0x915   : > { %v2381_v43 = vsub.f32 %v2315_v25, %v2354_v33 }
 0x917   : > { %v4054_v36 = vpop.eup %3260  ;;  %v2401_v42 = vmul.f32 1.442695, %v2381_v43 }
 0x918   : > { %2431 = vadd.xlane.f32.xlu0 %v4054_v36 }
 0x919   : > { %2505 = vrot.lane.b32.xlu1 %v3962_v1, %s3328_s21  ;;  %v4069_v1 = vpop.f32.mrf.mxu0 }
 0x91c   : > { %v2356_v50 = vpop.xlane.xlu1 %2355 }
 0x91d   : > { %v2382_v46 = vsub.f32 %v2317_v12, %v2356_v50 }
 0x91f   : > { %v2403_v30 = vmul.f32 1.442695, %v2382_v46 }
 0x920   : > { %2507 = vrot.lane.b32.xlu2 %v3973_v15, %s3328_s21  ;;  %2365 = vmax.xlane.f32.xlu0 %v4047_v35  ;;  %v2379_v15 = vsub.f32 %v2310_v62, %v2350_v45  ;;  %s647_s21 = scalar_lea.vmem %s4213_s20, %s2854_s25 }
 0x921   : > { %3262 = vpow2.f32 %v2403_v30  ;;  %v4074_v60 = vpop.f32.mrf.mxu0 }
 0x922   : > { %v2397_v7 = vmul.f32 1.442695, %v2379_v15 }
 0x924   : > { %v2358_v32 = vpop.xlane.xlu2 %2357 }
 0x925   : > { %v2383_v49 = vsub.f32 %v2320_v4, %v2358_v32 }
 0x927   : > { %v4066_v58 = vpop.eup %3262  ;;  %v2405_v52 = vmul.f32 1.442695, %v2383_v49 }
 0x928   : > { %2435 = vadd.xlane.f32.xlu0 %v4066_v58 }
 0x929   : > { %3264 = vpow2.f32 %v2405_v52 }
 0x92a   : > { %3266 = vpow2.f32 %v2397_v7 }
 0x92b   : > { %3268 = vpow2.f32 %v2401_v42 }
 0x92c   : > { %v2360_v6 = vpop.xlane.xlu0 %2359 }
 0x92d   : > { %v2384_v5 = vsub.f32 %v4034_v18, %v2360_v6 }
 0x92f   : > { %v4071_v0 = vpop.eup %3264  ;;  %v2407_v16 = vmul.f32 1.442695, %v2384_v5 }
 0x930   : > { %2437 = vadd.xlane.f32.xlu0 %v4071_v0  ;;  %v3267_v3 = vpop.eup %3266 }
 0x931   : > { %v4078_v10 = vpop.eup %3268  ;;  %3270 = vpow2.f32 %v2407_v16 }
 0x937   : > { %v4086_v8 = vpop.eup %3270 }
 0x938   : > { %2375 = vmax.xlane.f32.xlu0 %v4074_v60 }
 0x93f   : > { %v2510_v63 = vpop.permute.xlu0 %2509 }
 0x940   : > { %2534 = vmatpush.bf16.msrb.mxu1 %v2510_v63 }
 0x943   : > { %2429 = vadd.xlane.f32.xlu1 %v3267_v3 }
 0x949   : > { %2363 = vmax.xlane.f32.xlu2 %v4042_v19 }
 0x94b   : > { %2433 = vadd.xlane.f32.xlu1 %v4078_v10 }
 0x951   : > { %2367 = vmax.xlane.f32.xlu2 %v4052_v40 }
 0x953   : > { %2371 = vmax.xlane.f32.xlu1 %v4064_v28 }
 0x959   : > { %2369 = vmax.xlane.f32.xlu2 %v4057_v2 }
 0x95b   : > { %2373 = vmax.xlane.f32.xlu1 %v4069_v1 }
 0x961   : > { %2439 = vadd.xlane.f32.xlu2 %v4086_v8 }
 0x96a   : > { %v2362_v9 = vpop.xlane.xlu0 %2361 }
 0x96b   : > { %v2385_v62 = vsub.f32 %v4039_v14, %v2362_v9 }
 0x96d   : > { %v2409_v11 = vmul.f32 1.442695, %v2385_v62 }
 0x96f   : > { %3272 = vpow2.f32 %v2409_v11 }
 0x973   : > { %v2426_v4 = vpop.xlane.xlu1 %2425 }
 0x975   : > { %v4090_v25 = vpop.eup %3272 }
 0x976   : > { %2441 = vadd.xlane.f32.xlu2 %v4090_v25 }
 0x97b   : > { %v2428_v12 = vpop.xlane.xlu2 %2427 }
 0x97c   : > { %3274 = vrcp.f32 %v2428_v12 }
 0x97d   : > { %3276 = vrcp.f32 %v2426_v4 }
 0x982   : > { %v3275_v17 = vpop.eup %3274 }
 0x983   : > { %v2508_v18 = vpop.permute.xlu2 %2507  ;;  %v3277_v23 = vpop.eup %3276  ;;  %v2474_v20 = vmul.f32 %v3275_v17, %v4049_v13 }
 0x984   : > { %2535 = vmatpush.bf16.msrb.mxu1 %v2508_v18  ;;  %v2473_v26 = vmul.f32 %v3277_v23, %v4044_v29 }
 0x986   : > { %v2489_v22 = vpack.c.bf16 %v2474_v20, %v2473_v26 }
 0x98b   : > { %v2506_v24 = vpop.permute.xlu1 %2505  ;;  %v2432_v14 = vpop.xlane.xlu0 %2431 }
 0x98c   : > { %2536 = vmatpush.bf16.msrb.mxu1 %v2506_v24 }
 0x98f   : > { %2537 = vmatmul.bf16.vlgmr.msrb.gmra.mxu1 %v2489_v22 }
 0x993   : > { %v2366_v51 = vpop.xlane.xlu0 %2365 }
 0x994   : > { %v2387_v59 = vsub.f32 %v4047_v35, %v2366_v51 }
 0x996   : > { %v2413_v37 = vmul.f32 1.442695, %v2387_v59 }
 0x998   : > { %3278 = vpow2.f32 %v2413_v37 }
 0x999   : > { %3280 = vrcp.f32 %v2432_v14 }
 0x99b   : > { %v2436_v13 = vpop.xlane.xlu0 %2435 }
 0x99e   : > { %v4096_v45 = vpop.eup %3278 }
 0x99f   : > { %2445 = vadd.xlane.f32.xlu0 %v4096_v45  ;;  %v3281_v50 = vpop.eup %3280 }
 0x9a0   : > { %v2476_v52 = vmul.f32 %v3281_v50, %v4054_v36 }
 0x9a3   : > { %v2438_v6 = vpop.xlane.xlu0 %2437 }
 0x9ab   : > { %v2376_v12 = vpop.xlane.xlu0 %2375 }
 0x9ac   : > { %v2392_v26 = vsub.f32 %v4074_v60, %v2376_v12 }
 0x9b6   : > { %v2430_v33 = vpop.xlane.xlu1 %2429 }
 0x9b7   : > { %3282 = vrcp.f32 %v2430_v33  ;;  %v3171_v33 = vld [vmem:[%s4210_s17 + $0x8] sm:$0xff] }
 0x9b8   : > { %2628 = vmatpush.bf16.msrb.mxu3 %v3171_v33 }
 0x9bc   : > { %v2364_v29 = vpop.xlane.xlu2 %2363 }
 0x9bd   : > { %v3283_v46 = vpop.eup %3282  ;;  %v2386_v30 = vsub.f32 %v4042_v19, %v2364_v29 }
 0x9be   : > { %v2434_v32 = vpop.xlane.xlu1 %2433  ;;  %v2475_v49 = vmul.f32 %v3283_v46, %v3267_v3 }
 0x9bf   : > { %v2411_v35 = vmul.f32 1.442695, %v2386_v30 }
 0x9c0   : > { %v2490_v15 = vpack.c.bf16 %v2476_v52, %v2475_v49 }
 0x9c1   : > { %3284 = vpow2.f32 %v2411_v35 }
 0x9c2   : > { %2542 = vmatmul.bf16.gmra.mxu1 %v2490_v15  ;;  %3286 = vrcp.f32 %v2434_v32 }
 0x9c3   : > { %3288 = vrcp.f32 %v2436_v13  ;;  %v3170_v13 = vld [vmem:[%s4210_s17] sm:$0xff] }
 0x9c4   : > { %v2368_v7 = vpop.xlane.xlu2 %2367  ;;  %2629 = vmatpush.bf16.msrb.mxu3 %v3170_v13 }
 0x9c5   : > { %v2388_v43 = vsub.f32 %v4052_v40, %v2368_v7 }
 0x9c6   : > { %v2372_v63 = vpop.xlane.xlu1 %2371 }
 0x9c7   : > { %v3285_v42 = vpop.eup %3284  ;;  %v2415_v5 = vmul.f32 1.442695, %v2388_v43  ;;  %v2390_v16 = vsub.f32 %v4064_v28, %v2372_v63 }
 0x9c8   : > { %2443 = vadd.xlane.f32.xlu1 %v3285_v42  ;;  %v3287_v19 = vpop.eup %3286 }
 0x9c9   : > { %3290 = vpow2.f32 %v2415_v5  ;;  %v2419_v3 = vmul.f32 1.442695, %v2390_v16  ;;  %v3289_v36 = vpop.eup %3288  ;;  %v2477_v62 = vmul.f32 %v3287_v19, %v4078_v10  ;;  %v2423_v10 = vmul.f32 1.442695, %v2392_v26 }
 0x9ca   : > { %v2478_v40 = vmul.f32 %v3289_v36, %v4066_v58 }
 0x9cb   : > { %3292 = vpow2.f32 %v2419_v3 }
 0x9cc   : > { %v2370_v9 = vpop.xlane.xlu2 %2369  ;;  %v2491_v28 = vpack.c.bf16 %v2478_v40, %v2477_v62 }
 0x9cd   : > { %v2389_v11 = vsub.f32 %v4057_v2, %v2370_v9 }
 0x9ce   : > { %v2374_v4 = vpop.xlane.xlu1 %2373 }
 0x9cf   : > { %v3291_v18 = vpop.eup %3290  ;;  %v2417_v17 = vmul.f32 1.442695, %v2389_v11  ;;  %v2391_v23 = vsub.f32 %v4069_v1, %v2374_v4 }
 0x9d0   : > { %2447 = vadd.xlane.f32.xlu2 %v3291_v18 }
 0x9d1   : > { %v4107_v20 = vpop.eup %3292  ;;  %3294 = vpow2.f32 %v2417_v17  ;;  %v2421_v24 = vmul.f32 1.442695, %v2391_v23 }
 0x9d2   : > { %2547 = vmatmul.bf16.gmra.mxu1 %v2491_v28  ;;  %2451 = vadd.xlane.f32.xlu0 %v4107_v20 }
 0x9d3   : > { %3296 = vpow2.f32 %v2421_v24 }
 0x9d4   : > { %3298 = vrcp.f32 %v2438_v6  ;;  %v2440_v2 = vpop.xlane.xlu2 %2439 }
 0x9d5   : > { %3300 = vrcp.f32 %v2440_v2 }
 0x9d6   : > { %3302 = vpow2.f32 %v2423_v10 }
 0x9d7   : > { %v3295_v58 = vpop.eup %3294 }
 0x9d8   : > { %2449 = vadd.xlane.f32.xlu1 %v3295_v58 }
 0x9d9   : > { %v4111_v14 = vpop.eup %3296 }
 0x9da   : > { %v3299_v1 = vpop.eup %3298  ;;  %2453 = vadd.xlane.f32.xlu2 %v4111_v14 }
 0x9db   : > { %v3301_v22 = vpop.eup %3300  ;;  %v2479_v51 = vmul.f32 %v3299_v1, %v4071_v0 }
 0x9dc   : > { %v2480_v60 = vmul.f32 %v3301_v22, %v4086_v8  ;;  %v3303_v59 = vpop.eup %3302 }
 0x9de   : > { %v2492_v37 = vpack.c.bf16 %v2480_v60, %v2479_v51 }
 0x9e0   : > { %2455 = vadd.xlane.f32.xlu1 %v3303_v59 }
 0x9e2   : > { %2552 = vmatmul.bf16.gmra.mxu1 %v2492_v37 }
 0x9e9   : > { %v2442_v0 = vpop.xlane.xlu2 %2441 }
 0x9ea   : > { %3304 = vrcp.f32 %v2442_v0 }
 0x9f0   : > { %v3305_v32 = vpop.eup %3304 }
 0x9f1   : > { %v2481_v52 = vmul.f32 %v3305_v32, %v4090_v25 }
 0xa0c   : > { %v2538_v50 = vpop.f32.mrf.mxu1 }
 0xa12   : > { %v2446_v7 = vpop.xlane.xlu0 %2445 }
 0xa14   : > { %v2540_v29 = vpop.f32.mrf.mxu1 }
 0xa15   : > { %v2578_v46 = vpack.c.bf16 %v2540_v29, %v2538_v50 }
 0xa17   : > { %3111 = vmatmul.msk.bf16.vlgmr.msrb.gmra.mxu3 %vm830_vm2, %v2578_v46 }
 0xa3b   : > { %v2444_v8 = vpop.xlane.xlu1 %2443 }
 0xa3c   : > { %3306 = vrcp.f32 %v2444_v8 }
 0xa3f   : > { %v2543_v30 = vpop.f32.mrf.mxu1 }
 0xa42   : > { %v3307_v49 = vpop.eup %3306 }
 0xa43   : > { %v2482_v35 = vmul.f32 %v3307_v49, %v3285_v42  ;;  %v2448_v15 = vpop.xlane.xlu2 %2447 }
 0xa44   : > { %3308 = vrcp.f32 %v2448_v15 }
 0xa45   : > { %v2493_v6 = vpack.c.bf16 %v2482_v35, %v2481_v52  ;;  %3310 = vrcp.f32 %v2446_v7  ;;  %v2452_v25 = vpop.xlane.xlu0 %2451 }
 0xa47   : > { %v2545_v43 = vpop.f32.mrf.mxu1  ;;  %2557 = vmatmul.bf16.gmra.mxu1 %v2493_v6 }
 0xa48   : > { %v2579_v63 = vpack.c.bf16 %v2545_v43, %v2543_v30 }
 0xa4a   : > { %3112 = vmatmul.msk.bf16.gmra.mxu3 %vm830_vm2, %v2579_v63  ;;  %v3309_v5 = vpop.eup %3308 }
 0xa4b   : > { %v3311_v19 = vpop.eup %3310  ;;  %v2484_v3 = vmul.f32 %v3309_v5, %v3291_v18  ;;  %v2450_v9 = vpop.xlane.xlu1 %2449  ;;  %v3172_v5 = vld [vmem:[%s4211_s18] sm:$0xff] }
 0xa4c   : > { %v2483_v36 = vmul.f32 %v3311_v19, %v4096_v45  ;;  %3312 = vrcp.f32 %v2450_v9  ;;  %2722 = vxpose.xlu0.c.b16.start [1/2] (short) (narrow) %v3172_v5, 16 }
 0xa4d   : > { %3314 = vrcp.f32 %v2452_v25  ;;  %v2454_v26 = vpop.xlane.xlu2 %2453 }
 0xa4e   : > { %v2494_v62 = vpack.c.bf16 %v2484_v3, %v2483_v36 }
 0xa4f   : > { %v2548_v16 = vpop.f32.mrf.mxu1 }
 0xa52   : > { %v3313_v12 = vpop.eup %3312 }
 0xa53   : > { %v3315_v40 = vpop.eup %3314  ;;  %v2485_v17 = vmul.f32 %v3313_v12, %v3295_v58  ;;  %v2456_v28 = vpop.xlane.xlu1 %2455 }
 0xa54   : > { %v2486_v23 = vmul.f32 %v3315_v40, %v4107_v20  ;;  %3316 = vrcp.f32 %v2456_v28 }
 0xa55   : > { %3318 = vrcp.f32 %v2454_v26 }
 0xa56   : > { %v2495_v18 = vpack.c.bf16 %v2486_v23, %v2485_v17 }
 0xa57   : > { %v2550_v42 = vpop.f32.mrf.mxu1  ;;  %2562 = vmatmul.bf16.gmra.mxu1 %v2494_v62 }
 0xa58   : > { %v2580_v11 = vpack.c.bf16 %v2550_v42, %v2548_v16 }
 0xa5a   : > { %3113 = vmatmul.msk.bf16.gmra.mxu3 %vm830_vm2, %v2580_v11  ;;  %v3317_v2 = vpop.eup %3316 }
 0xa5b   : > { %v3319_v10 = vpop.eup %3318  ;;  %v2488_v1 = vmul.f32 %v3317_v2, %v3303_v59 }
 0xa5c   : > { %v2487_v22 = vmul.f32 %v3319_v10, %v4111_v14 }
 0xa5e   : > { %v2496_v60 = vpack.c.bf16 %v2488_v1, %v2487_v22 }
 0xa5f   : > { %v2553_v4 = vpop.f32.mrf.mxu1 }
 0xa67   : > { %v2555_v45 = vpop.f32.mrf.mxu1  ;;  %2567 = vmatmul.bf16.gmra.mxu1 %v2495_v18 }
 0xa68   : > { %v2581_v24 = vpack.c.bf16 %v2555_v45, %v2553_v4 }
 0xa6a   : > { %3114 = vmatmul.msk.bf16.gmra.mxu3 %vm830_vm2, %v2581_v24 }
 0xa77   : > { %2572 = vmatmul.bf16.gmra.mxu1 %v2496_v60 }
 0xa9a   : > { %v2631_v58 = vpop.f32.mrf.mxu3 }
 0xa9b   : > { %v4131_v20 = vadd.f32 %v2631_v58, %v3903_v57 }
 0xaa2   : > { %v2633_v51 = vpop.f32.mrf.mxu3 }
 0xaa3   : > { %v4134_v37 = vadd.f32 %v2633_v51, %v3908_v47 }
 0xaa5   : > { %v2691_v33 = vpack.c.bf16 %v4134_v37, %v4131_v20 }
 0xaa7   : > { %v2742_v58 = vsel %vm830_vm2, %v2691_v33, 0 }
 0xac4   : > { %v2558_v13 = vpop.f32.mrf.mxu1 }
 0xacc   : > { %v2560_v50 = vpop.f32.mrf.mxu1 }
 0xacd   : > { %v2582_v29 = vpack.c.bf16 %v2560_v50, %v2558_v13  ;;  %v2636_v46 = vpop.f32.mrf.mxu3  ;;  %v3330_v13 = vmov 839922192  }
 0xace   : > { %v4140_v0 = vadd.f32 %v2636_v46, %v3934_v34  ;;  %v2707_v50 = vunpack.c.l.s4 %v3330_v13 }
 0xacf   : > { %3115 = vmatmul.msk.bf16.gmra.mxu3 %vm830_vm2, %v2582_v29 }
 0xad0   : > { %v2708_v29 = vunpack.c.0.s8 %v2707_v50 }
 0xad4   : > { %v2563_v14 = vpop.f32.mrf.mxu1 }
 0xad5   : > { %v2638_v59 = vpop.f32.mrf.mxu3 }
 0xad6   : > { %v4143_v57 = vadd.f32 %v2638_v59, %v3939_v41 }
 0xad8   : > { %v2692_v47 = vpack.c.bf16 %v4143_v57, %v4140_v0 }
 0xadc   : > { %v2565_v8 = vpop.f32.mrf.mxu1 }
 0xadd   : > { %v2583_v30 = vpack.c.bf16 %v2565_v8, %v2563_v14  ;;  %v2641_v32 = vpop.f32.mrf.mxu3 }
 0xade   : > { %v2675_v35 = vadd.f32 %v2641_v32, %v3945_v21  ;;  %v3173_v21 = vld [vmem:[%s4211_s18 + $0x8] sm:$0xff] }
 0xadf   : > { %3116 = vmatmul.msk.bf16.gmra.mxu3 %vm830_vm2, %v2583_v30  ;;  %2723 = vxpose.xlu0.c.b16.end [2/2] (short) (narrow) %v3173_v21, 16 }
 0xae4   : > { %v2568_v49 = vpop.f32.mrf.mxu1 }
 0xae5   : > { %v2643_v52 = vpop.f32.mrf.mxu3 }
 0xae6   : > { %v2676_v15 = vadd.f32 %v2643_v52, %v3954_v27 }
 0xae8   : > { %v2693_v6 = vpack.c.bf16 %v2676_v15, %v2675_v35 }
 0xaec   : > { %v2570_v34 = vpop.f32.mrf.mxu1 }
 0xaed   : > { %v2584_v7 = vpack.c.bf16 %v2570_v34, %v2568_v49  ;;  %v2646_v27 = vpop.f32.mrf.mxu3 }
 0xaee   : > { %v2677_v1 = vadd.f32 %v2646_v27, %v3960_v55  ;;  %v2745_v55 = vsel %vm830_vm2, %v2692_v47, 0 }
 0xaef   : > { %3117 = vmatmul.msk.bf16.gmra.mxu3 %vm830_vm2, %v2584_v7 }
 0xaf4   : > { %v2573_v41 = vpop.f32.mrf.mxu1 }
 0xaf5   : > { %v2648_v16 = vpop.f32.mrf.mxu3 }
 0xafc   : > { %v2575_v43 = vpop.f32.mrf.mxu1 }
 0xafd   : > { %v2585_v63 = vpack.c.bf16 %v2575_v43, %v2573_v41 }
 0xaff   : > { %3118 = vmatmul.msk.bf16.gmra.mxu3 %vm830_vm2, %v2585_v63 }
 0xb52   : > { %v2651_v19 = vpop.f32.mrf.mxu3 }
 0xb53   : > { %v2679_v36 = vadd.f32 %v2651_v19, %v3971_v53 }
 0xb5a   : > { %v2653_v3 = vpop.f32.mrf.mxu3 }
 0xb5b   : > { %v2680_v9 = vadd.f32 %v2653_v3, %v3976_v39 }
 0xb5d   : > { %v2695_v62 = vpack.c.bf16 %v2680_v9, %v2679_v36 }
 0xb62   : > { %v2656_v25 = vpop.f32.mrf.mxu3 }
 0xb63   : > { %v2681_v2 = vadd.f32 %v2656_v25, %v3987_v44  ;;  %v3329_v44 = vmov 0  }
 0xb64   : > { %3190 = vset.pattern.permute.xlu2 %v3329_v44  ;;  %3191 = vset.pattern.permute.xlu0 %v3329_v44 }
 0xb6a   : > { %v2658_v42 = vpop.f32.mrf.mxu3 }
 0xb6b   : > { %v2682_v45 = vadd.f32 %v2658_v42, %v3990_v38  ;;  %v2699_v38 = vld [vmem:[%s4212_s19] sm:$0x3] }
 0xb6c   : > { %v2700_v60 = vunpack.c.l.bf16 %v2699_v38 }
 0xb6d   : > { %v2696_v10 = vpack.c.bf16 %v2682_v45, %v2681_v2 }
 0xb6e   : > { %2703 = vperm.xlu2 %3190, %v2700_v60  }
 0xb72   : > { %v2661_v11 = vpop.f32.mrf.mxu3 }
 0xb73   : > { %v2683_v53 = vadd.f32 %v2661_v11, %v3997_v31 }
 0xb7a   : > { %v2663_v12 = vpop.f32.mrf.mxu3 }
 0xb7b   : > { %v2684_v18 = vadd.f32 %v2663_v12, %v4001_v56  ;;  %v2754_v56 = vsel %vm830_vm2, %v2695_v62, 0  ;;  %v2730_v51 = vpop.trf.xlu0 }
 0xb7d   : > { %v2697_v39 = vpack.c.bf16 %v2684_v18, %v2683_v53 }
 0xb7f   : > { %v2760_v24 = vsel %vm830_vm2, %v2697_v39, 0 }
 0xb82   : > { %v2666_v4 = vpop.f32.mrf.mxu3 }
 0xb83   : > { %v2685_v17 = vadd.f32 %v2666_v4, %v4007_v48  ;;  %v2757_v48 = vsel %vm830_vm2, %v2696_v10, 0 }
 0xb8a   : > { %v2668_v40 = vpop.f32.mrf.mxu3 }
 0xb8b   : > { %v2686_v23 = vadd.f32 %v2668_v40, %v4011_v54  ;;  %v2678_v54 = vadd.f32 %v2648_v16, %v3965_v61  ;;  %v2748_v61 = vsel %vm830_vm2, %v2693_v6, 0 }
 0xb8d   : > { %v2698_v28 = vpack.c.bf16 %v2686_v23, %v2685_v17  ;;  %v2694_v31 = vpack.c.bf16 %v2678_v54, %v2677_v1 }
 0xb8f   : > { %v2763_v26 = vsel %vm830_vm2, %v2698_v28, 0  ;;  %v2751_v22 = vsel %vm830_vm2, %v2694_v31, 0 }
 0xb90   : > { %2765 = vmatpush.bf16.xpose.msra.mxu2 %v2763_v26 }
 0xb98   : > { %2766 = vmatpush.bf16.xpose.msra.mxu2 %v2760_v24 }
 0xba0   : > { %2767 = vmatpush.bf16.xpose.msra.mxu2 %v2757_v48 }
 0xba8   : > { %2768 = vmatpush.bf16.xpose.msra.mxu2 %v2754_v56 }
 0xbb0   : > { %2769 = vmatpush.bf16.xpose.msra.mxu2 %v2751_v22 }
 0xbb8   : > { %2770 = vmatpush.bf16.xpose.msra.mxu2 %v2748_v61 }
 0xbc0   : > { %2771 = vmatpush.bf16.xpose.msra.mxu2 %v2745_v55 }
 0xbc8   : > { %2772 = vmatpush.bf16.xpose.msra.mxu2 %v2742_v58  ;;  %v2704_v46 = vpop.permute.xlu2 %2703 }
 0xbc9   : > { %v2709_v14 = vperm.slane %v2704_v46, %v2708_v29 }
 0xbcf   : > { %3127 = vmatmul.msk.bf16.vlgmr.msra.gmra.mxu2 %vm830_vm2, %v2730_v51 }
 0xc52   : > { %v2774_v59 = vpop.f32.mrf.mxu2 }
 0xc53   : > { %v2775_v0 = vadd.f32 %v2774_v59, %v2709_v14 }
 0xc55   : > { %v2778_v57 = vpack.c.bf16 %v2775_v0, %v2775_v0 }
 0xc57   : > { %2779 = vst [vmem:[%s647_s21] sm:$0x3] %v2778_v57 }
 0xc5a   : > { %v2776_v20 = vpop.f32.mrf.mxu2 }
 0xc5b PF: > { %s30_s1 = sadd.s32 1, %s3326_s1  }
 0xc5c   : > { %p27_p4 = scmp.ge.s32.totalorder %s30_s1, 4  }
 0xc5e   :  { %29 = sbr.rel (!%p27_p4) target bundleno = 6 (0x6), region = 133 }

</bundles_post_ra>
